<compile_context>
chip_gen: v7x
topology: tpu7x:2x2x1
jax: 0.10.0
libtpu: 0.0.40
codegen_flags: <defaults>
</compile_context>

<pallas_src>
import functools

import numpy as np

import jax
import jax.numpy as jnp
from jax.experimental import pallas as pl
from jax.experimental.pallas import tpu as pltpu


def _round_up(x, m):
    return (x + m - 1) // m * m


# --------------------------------------------------------------------------------------
# One-time host-side parameter preprocessing: conv+relu+pool stages -> dense matrices.
# --------------------------------------------------------------------------------------
def build_fused_params(params, *, input_shape=(16, 16), in_channels=1,
                       out_channels=(6, 12), kernel_size=5, padding=1,
                       num_linear_units=50, output_dim=20):
    """Lower each conv layer to a dense matrix M (K_in x 4*q) + bias row (1 x 4*q).

    Columns are grouped into the 4 quadrants (dy, dx) of the 2x2 max-pool window and
    lane-padded to a multiple of 128, so the kernel computes
        p = max_over_quads( relu(x_flat @ M + bias) )
    which equals conv(pad=1) -> ReLU -> MaxPool2d(2) (floor mode) exactly.
    The last conv layer uses channel-major (C, H, W) column order inside each quadrant
    so that the pooled result is already in PyTorch x.view(B, -1) flatten order.
    FC weights are given as (in, out) (PyTorch Linear weight transposed) and are
    zero-padded to lane-aligned shapes.
    """
    assert len(out_channels) == 2, "specialized to the default 2 conv layers"
    H, W = input_shape
    KH = KW = kernel_size

    mats, biases = [], []
    in_h, in_w, in_c = H, W, in_channels
    in_width = in_c * H * W                       # 256 for the default config

    def in_row(ci, iy, ix, _w=W, _hw=H * W):      # layer-0 input = torch view (C,H,W) flat
        return ci * _hw + iy * _w + ix

    n_layers = len(out_channels)
    for li, cout in enumerate(out_channels):
        conv_h = in_h + 2 * padding - (KH - 1)
        conv_w = in_w + 2 * padding - (KW - 1)
        ph, pw = conv_h // 2, conv_w // 2          # floor-mode 2x2 pool output
        last = li == n_layers - 1
        if last:                                   # CHW inside quad -> matches torch flatten
            def out_col(c, y, x, _ph=ph, _pw=pw):
                return c * (_ph * _pw) + y * _pw + x
        else:                                      # HWC inside quad (next layer's input layout)
            def out_col(c, y, x, _pw=pw, _c=cout):
                return (y * _pw + x) * _c + c

        qpad = _round_up(cout * ph * pw, 128)      # lane-align each quadrant block
        M = np.zeros((in_width, 4 * qpad), np.float32)
        bias = np.zeros((1, 4 * qpad), np.float32)
        wnp = np.asarray(params[f"w{li + 1}"], np.float32)   # (cout, cin, kh, kw) OIHW
        bnp = np.asarray(params[f"b{li + 1}"], np.float32)

        for dy in range(2):
            for dx in range(2):
                q = dy * 2 + dx
                for py in range(ph):
                    for px in range(pw):
                        oy, ox = 2 * py + dy, 2 * px + dx
                        for co in range(cout):
                            col = q * qpad + out_col(co, py, px)
                            bias[0, col] = bnp[co]
                            for ci in range(in_c):
                                for ky in range(KH):
                                    iy = oy + ky - padding
                                    if not 0 <= iy < in_h:
                                        continue
                                    for kx in range(KW):
                                        ix = ox + kx - padding
                                        if not 0 <= ix < in_w:
                                            continue
                                        M[in_row(ci, iy, ix), col] = wnp[co, ci, ky, kx]
        mats.append(M)
        biases.append(bias)
        # next layer consumes the pooled output of this layer (same column layout, padded)
        in_h, in_w, in_c = ph, pw, cout
        in_width = qpad
        in_row = (lambda ci, iy, ix, _f=out_col: _f(ci, iy, ix))

    flat_real = in_c * in_h * in_w                 # 48
    nh_pad = _round_up(num_linear_units, 128)      # 128
    wf1 = np.asarray(params["wf1"], np.float32)    # (48, 50)  == torch Linear weight .T
    bf1 = np.asarray(params["bf1"], np.float32)
    wf2 = np.asarray(params["wf2"], np.float32)    # (50, 20)
    bf2 = np.asarray(params["bf2"], np.float32)

    wf1p = np.zeros((in_width, nh_pad), np.float32)
    wf1p[:flat_real, :num_linear_units] = wf1
    bf1p = np.zeros((1, nh_pad), np.float32)
    bf1p[0, :num_linear_units] = bf1
    wf2p = np.zeros((nh_pad, output_dim), np.float32)
    wf2p[:num_linear_units, :] = wf2
    bf2p = bf2.reshape(1, output_dim)

    return dict(m1=jnp.asarray(mats[0]), c1b=jnp.asarray(biases[0]),
                m2=jnp.asarray(mats[1]), c2b=jnp.asarray(biases[1]),
                wf1=jnp.asarray(wf1p), bf1=jnp.asarray(bf1p),
                wf2=jnp.asarray(wf2p), bf2=jnp.asarray(bf2p))


# --------------------------------------------------------------------------------------
# The single fused Pallas kernel.
# --------------------------------------------------------------------------------------
def _fused_cnn_kernel(x_ref, m1_ref, c1b_ref, m2_ref, c2b_ref,
                      wf1_ref, bf1_ref, wf2_ref, bf2_ref, o_ref, *, q1, q2):
    x = x_ref[...]                                                   # (TB, 256)

    # conv1 + ReLU + 2x2 max-pool  (lane-aligned matmul, N = 4*q1 = 1536)
    h1 = jnp.dot(x, m1_ref[...], preferred_element_type=jnp.float32) + c1b_ref[...]
    h1 = jnp.maximum(h1, 0.0)
    p1 = jnp.maximum(jnp.maximum(h1[:, 0:q1],       h1[:, q1:2 * q1]),
                     jnp.maximum(h1[:, 2 * q1:3 * q1], h1[:, 3 * q1:4 * q1]))  # (TB, 384)

    # conv2 + ReLU + 2x2 max-pool  (N = 4*q2 = 512); column order == torch flatten order
    h2 = jnp.dot(p1, m2_ref[...], preferred_element_type=jnp.float32) + c2b_ref[...]
    h2 = jnp.maximum(h2, 0.0)
    p2 = jnp.maximum(jnp.maximum(h2[:, 0:q2],       h2[:, q2:2 * q2]),
                     jnp.maximum(h2[:, 2 * q2:3 * q2], h2[:, 3 * q2:4 * q2]))  # (TB, 128)

    # fc1 + ReLU, fc2 + ReLU  (FCEmbedding ends with ReLU)
    f1 = jnp.maximum(
        jnp.dot(p2, wf1_ref[...], preferred_element_type=jnp.float32) + bf1_ref[...], 0.0)
    f2 = jnp.maximum(
        jnp.dot(f1, wf2_ref[...], preferred_element_type=jnp.float32) + bf2_ref[...], 0.0)
    o_ref[...] = f2.astype(o_ref.dtype)


def cnn_embedding_forward(x, fused, *, block_b=128):
    """x: (B, in_channels*H*W) flat input, exactly as CNNEmbedding.forward receives it."""
    B, feat = x.shape
    assert fused["m1"].shape[0] == feat, (fused["m1"].shape, feat)
    q1 = fused["m1"].shape[1] // 4
    q2 = fused["m2"].shape[1] // 4
    out_dim = fused["wf2"].shape[1]

    tb = min(block_b, _round_up(B, 8))             # batch tile (sublane-aligned)
    bp = _round_up(B, tb)
    if bp != B:
        x = jnp.pad(x, ((0, bp - B), (0, 0)))      # rows are independent; pad rows dropped below

    def const_spec(arr):                           # whole weight resident in VMEM, never re-DMA'd
        return pl.BlockSpec(arr.shape, lambda i: (0,) * arr.ndim)

    out = pl.pallas_call(
        functools.partial(_fused_cnn_kernel, q1=q1, q2=q2),
        out_shape=jax.ShapeDtypeStruct((bp, out_dim), jnp.float32),
        grid=(bp // tb,),
        in_specs=[pl.BlockSpec((tb, feat), lambda i: (i, 0)),
                  const_spec(fused["m1"]), const_spec(fused["c1b"]),
                  const_spec(fused["m2"]), const_spec(fused["c2b"]),
                  const_spec(fused["wf1"]), const_spec(fused["bf1"]),
                  const_spec(fused["wf2"]), const_spec(fused["bf2"])],
        out_specs=pl.BlockSpec((tb, out_dim), lambda i: (i, 0)),
        compiler_params=pltpu.CompilerParams(dimension_semantics=("parallel",)),
    )(x, fused["m1"], fused["c1b"], fused["m2"], fused["c2b"],
      fused["wf1"], fused["bf1"], fused["wf2"], fused["bf2"])
    return out[:B]


# --------------------------------------------------------------------------------------
# Pure-JAX reference (mirrors the PyTorch module) for an in-script correctness check.
# --------------------------------------------------------------------------------------
def reference_forward(x, params, in_channels, input_shape):
    B = x.shape[0]
    a = x.reshape(B, in_channels, *input_shape)
    hp = jax.lax.Precision.HIGHEST
    for w, b in ((params["w1"], params["b1"]), (params["w2"], params["b2"])):
        a = jax.lax.conv_general_dilated(
            a, w, window_strides=(1, 1), padding=((1, 1), (1, 1)),
            dimension_numbers=("NCHW", "OIHW", "NCHW"), precision=hp)
        a = jax.nn.relu(a + b.reshape(1, -1, 1, 1))
        a = jax.lax.reduce_window(a, -jnp.inf, jax.lax.max,
                                  (1, 1, 2, 2), (1, 1, 2, 2), "VALID")
    flat = a.reshape(B, -1)
    h = jax.nn.relu(jnp.dot(flat, params["wf1"], precision=hp) + params["bf1"])
    return jax.nn.relu(jnp.dot(h, params["wf2"], precision=hp) + params["bf2"])


if __name__ == "__main__":
    key = jax.random.PRNGKey(0)
    ks = jax.random.split(key, 9)

    B = 2
    in_channels = 1
    input_shape = (16, 16)
    out_channels = [6, 12]
    kernel_size = 5
    num_linear_units = 50
    output_dim = 20
    flat_dim = out_channels[-1] * 2 * 2            # 16 -> 14 -> 7 -> 5 -> 2  => 12*2*2 = 48

    # deterministic synthetic parameters; conv weights in PyTorch OIHW layout,
    # linear weights stored as (in, out) = PyTorch Linear weight transposed.
    params = {
        "w1": 0.1 * jax.random.normal(ks[1], (out_channels[0], in_channels,
                                              kernel_size, kernel_size), jnp.float32),
        "b1": 0.1 * jax.random.normal(ks[2], (out_channels[0],), jnp.float32),
        "w2": 0.1 * jax.random.normal(ks[3], (out_channels[1], out_channels[0],
                                              kernel_size, kernel_size), jnp.float32),
        "b2": 0.1 * jax.random.normal(ks[4], (out_channels[1],), jnp.float32),
        "wf1": 0.1 * jax.random.normal(ks[5], (flat_dim, num_linear_units), jnp.float32),
        "bf1": 0.1 * jax.random.normal(ks[6], (num_linear_units,), jnp.float32),
        "wf2": 0.1 * jax.random.normal(ks[7], (num_linear_units, output_dim), jnp.float32),
        "bf2": 0.1 * jax.random.normal(ks[8], (output_dim,), jnp.float32),
    }

    # input is (batch, in_channels * H * W), as accepted by CNNEmbedding.forward
    x = jax.random.normal(ks[0], (B, in_channels * input_shape[0] * input_shape[1]),
                          jnp.float32)

    fused = build_fused_params(params, input_shape=input_shape, in_channels=in_channels,
                               out_channels=tuple(out_channels), kernel_size=kernel_size,
                               num_linear_units=num_linear_units, output_dim=output_dim)

    forward = jax.jit(cnn_embedding_forward, static_argnames=("block_b",))
    out = forward(x, fused)
    jax.block_until_ready(out)
    assert out.shape == (B, output_dim), out.shape

    ref = reference_forward(x, params, in_channels, input_shape)
    err = float(jnp.max(jnp.abs(out - ref)))
    assert err < 2e-2, f"kernel/reference mismatch, max abs err = {err}"

    print("KERNEL_OK")
</pallas_src>

<mosaic_0001>
module attributes {stable_mosaic.version = 11 : i64} {
  func.func @_fused_cnn_kernel(%arg0: i32, %arg1: memref<8x256xf32, #tpu.memory_space<vmem>>, %arg2: memref<256x1536xf32, #tpu.memory_space<vmem>>, %arg3: memref<1x1536xf32, #tpu.memory_space<vmem>>, %arg4: memref<384x512xf32, #tpu.memory_space<vmem>>, %arg5: memref<1x512xf32, #tpu.memory_space<vmem>>, %arg6: memref<128x128xf32, #tpu.memory_space<vmem>>, %arg7: memref<1x128xf32, #tpu.memory_space<vmem>>, %arg8: memref<128x20xf32, #tpu.memory_space<vmem>>, %arg9: memref<1x20xf32, #tpu.memory_space<vmem>>, %arg10: memref<8x20xf32, #tpu.memory_space<vmem>>) attributes {dimension_semantics = [#tpu.dimension_semantics<parallel>], iteration_bounds = array<i64: 1>, scalar_prefetch = 0 : i64, scratch_operands = 0 : i64, tpu.core_type = #tpu.core_type<tc>, window_params = [{transform_indices = @transform_0, window_bounds = array<i64: 8, 256>}, {pipeline_mode = #tpu.pipeline_mode<synchronous>, transform_indices = @transform_1, window_bounds = array<i64: 256, 1536>}, {pipeline_mode = #tpu.pipeline_mode<synchronous>, transform_indices = @transform_2, window_bounds = array<i64: 1, 1536>}, {pipeline_mode = #tpu.pipeline_mode<synchronous>, transform_indices = @transform_3, window_bounds = array<i64: 384, 512>}, {pipeline_mode = #tpu.pipeline_mode<synchronous>, transform_indices = @transform_4, window_bounds = array<i64: 1, 512>}, {pipeline_mode = #tpu.pipeline_mode<synchronous>, transform_indices = @transform_5, window_bounds = array<i64: 128, 128>}, {pipeline_mode = #tpu.pipeline_mode<synchronous>, transform_indices = @transform_6, window_bounds = array<i64: 1, 128>}, {pipeline_mode = #tpu.pipeline_mode<synchronous>, transform_indices = @transform_7, window_bounds = array<i64: 128, 20>}, {pipeline_mode = #tpu.pipeline_mode<synchronous>, transform_indices = @transform_8, window_bounds = array<i64: 1, 20>}, {transform_indices = @transform_9, window_bounds = array<i64: 8, 20>}]} {
    %c0 = arith.constant 0 : index
    %c0_0 = arith.constant 0 : index
    %0 = vector.load %arg1[%c0, %c0_0] : memref<8x256xf32, #tpu.memory_space<vmem>>, vector<8x256xf32>
    %c0_1 = arith.constant 0 : index
    %c0_2 = arith.constant 0 : index
    %1 = vector.load %arg2[%c0_1, %c0_2] : memref<256x1536xf32, #tpu.memory_space<vmem>>, vector<256x1536xf32>
    %cst = arith.constant dense<0.000000e+00> : vector<8x1536xf32>
    %2 = tpu.matmul %0, %1, %cst {dimension_numbers = #tpu.dot_dimension_numbers<[1], [0], [0], [1], [0, 0, 1, 1], [], []>} : vector<8x256xf32>, vector<256x1536xf32>, vector<8x1536xf32> -> vector<8x1536xf32>
    %c0_3 = arith.constant 0 : index
    %c0_4 = arith.constant 0 : index
    %3 = vector.load %arg3[%c0_3, %c0_4] : memref<1x1536xf32, #tpu.memory_space<vmem>>, vector<1x1536xf32>
    %4 = vector.broadcast %3 : vector<1x1536xf32> to vector<8x1536xf32>
    %5 = arith.addf %2, %4 : vector<8x1536xf32>
    %cst_5 = arith.constant 0.000000e+00 : f32
    %6 = vector.broadcast %cst_5 : f32 to vector<8x1536xf32>
    %7 = arith.maximumf %5, %6 : vector<8x1536xf32>
    %8 = vector.extract_strided_slice %7 {offsets = [0, 0], sizes = [8, 384], strides = [1, 1]} : vector<8x1536xf32> to vector<8x384xf32>
    %9 = vector.extract_strided_slice %7 {offsets = [0, 384], sizes = [8, 384], strides = [1, 1]} : vector<8x1536xf32> to vector<8x384xf32>
    %10 = arith.maximumf %8, %9 : vector<8x384xf32>
    %11 = vector.extract_strided_slice %7 {offsets = [0, 768], sizes = [8, 384], strides = [1, 1]} : vector<8x1536xf32> to vector<8x384xf32>
    %12 = vector.extract_strided_slice %7 {offsets = [0, 1152], sizes = [8, 384], strides = [1, 1]} : vector<8x1536xf32> to vector<8x384xf32>
    %13 = arith.maximumf %11, %12 : vector<8x384xf32>
    %14 = arith.maximumf %10, %13 : vector<8x384xf32>
    %c0_6 = arith.constant 0 : index
    %c0_7 = arith.constant 0 : index
    %15 = vector.load %arg4[%c0_6, %c0_7] : memref<384x512xf32, #tpu.memory_space<vmem>>, vector<384x512xf32>
    %cst_8 = arith.constant dense<0.000000e+00> : vector<8x512xf32>
    %16 = tpu.matmul %14, %15, %cst_8 {dimension_numbers = #tpu.dot_dimension_numbers<[1], [0], [0], [1], [0, 0, 1, 1], [], []>} : vector<8x384xf32>, vector<384x512xf32>, vector<8x512xf32> -> vector<8x512xf32>
    %c0_9 = arith.constant 0 : index
    %c0_10 = arith.constant 0 : index
    %17 = vector.load %arg5[%c0_9, %c0_10] : memref<1x512xf32, #tpu.memory_space<vmem>>, vector<1x512xf32>
    %18 = vector.broadcast %17 : vector<1x512xf32> to vector<8x512xf32>
    %19 = arith.addf %16, %18 : vector<8x512xf32>
    %cst_11 = arith.constant 0.000000e+00 : f32
    %20 = vector.broadcast %cst_11 : f32 to vector<8x512xf32>
    %21 = arith.maximumf %19, %20 : vector<8x512xf32>
    %22 = vector.extract_strided_slice %21 {offsets = [0, 0], sizes = [8, 128], strides = [1, 1]} : vector<8x512xf32> to vector<8x128xf32>
    %23 = vector.extract_strided_slice %21 {offsets = [0, 128], sizes = [8, 128], strides = [1, 1]} : vector<8x512xf32> to vector<8x128xf32>
    %24 = arith.maximumf %22, %23 : vector<8x128xf32>
    %25 = vector.extract_strided_slice %21 {offsets = [0, 256], sizes = [8, 128], strides = [1, 1]} : vector<8x512xf32> to vector<8x128xf32>
    %26 = vector.extract_strided_slice %21 {offsets = [0, 384], sizes = [8, 128], strides = [1, 1]} : vector<8x512xf32> to vector<8x128xf32>
    %27 = arith.maximumf %25, %26 : vector<8x128xf32>
    %28 = arith.maximumf %24, %27 : vector<8x128xf32>
    %c0_12 = arith.constant 0 : index
    %c0_13 = arith.constant 0 : index
    %29 = vector.load %arg6[%c0_12, %c0_13] : memref<128x128xf32, #tpu.memory_space<vmem>>, vector<128x128xf32>
    %cst_14 = arith.constant dense<0.000000e+00> : vector<8x128xf32>
    %30 = tpu.matmul %28, %29, %cst_14 {dimension_numbers = #tpu.dot_dimension_numbers<[1], [0], [0], [1], [0, 0, 1, 1], [], []>} : vector<8x128xf32>, vector<128x128xf32>, vector<8x128xf32> -> vector<8x128xf32>
    %c0_15 = arith.constant 0 : index
    %c0_16 = arith.constant 0 : index
    %31 = vector.load %arg7[%c0_15, %c0_16] : memref<1x128xf32, #tpu.memory_space<vmem>>, vector<1x128xf32>
    %32 = vector.broadcast %31 : vector<1x128xf32> to vector<8x128xf32>
    %33 = arith.addf %30, %32 : vector<8x128xf32>
    %cst_17 = arith.constant 0.000000e+00 : f32
    %34 = vector.broadcast %cst_17 : f32 to vector<8x128xf32>
    %35 = arith.maximumf %33, %34 : vector<8x128xf32>
    %c0_18 = arith.constant 0 : index
    %c0_19 = arith.constant 0 : index
    %36 = vector.load %arg8[%c0_18, %c0_19] : memref<128x20xf32, #tpu.memory_space<vmem>>, vector<128x20xf32>
    %cst_20 = arith.constant dense<0.000000e+00> : vector<8x20xf32>
    %37 = tpu.matmul %35, %36, %cst_20 {dimension_numbers = #tpu.dot_dimension_numbers<[1], [0], [0], [1], [0, 0, 1, 1], [], []>} : vector<8x128xf32>, vector<128x20xf32>, vector<8x20xf32> -> vector<8x20xf32>
    %c0_21 = arith.constant 0 : index
    %c0_22 = arith.constant 0 : index
    %38 = vector.load %arg9[%c0_21, %c0_22] : memref<1x20xf32, #tpu.memory_space<vmem>>, vector<1x20xf32>
    %39 = vector.broadcast %38 : vector<1x20xf32> to vector<8x20xf32>
    %40 = arith.addf %37, %39 : vector<8x20xf32>
    %cst_23 = arith.constant 0.000000e+00 : f32
    %41 = vector.broadcast %cst_23 : f32 to vector<8x20xf32>
    %42 = arith.maximumf %40, %41 : vector<8x20xf32>
    %c0_24 = arith.constant 0 : index
    %c0_25 = arith.constant 0 : index
    %43 = vector.load %arg10[%c0_24, %c0_25] : memref<8x20xf32, #tpu.memory_space<vmem>>, vector<8x20xf32>
    tpu.vector_store %arg10[%c0_24, %c0_25], %42 {strides = array<i32>} : memref<8x20xf32, #tpu.memory_space<vmem>>, vector<8x20xf32>,
    return
  }
  func.func @transform_0(%arg0: i32) -> (i32, i32) {
    %c0_i32 = arith.constant 0 : i32
    %c0_i32_0 = arith.constant 0 : i32
    return %arg0, %c0_i32 : i32, i32
  }
  func.func @transform_1(%arg0: i32) -> (i32, i32) {
    %c0_i32 = arith.constant 0 : i32
    %c0_i32_0 = arith.constant 0 : i32
    %c0_i32_1 = arith.constant 0 : i32
    return %c0_i32, %c0_i32_0 : i32, i32
  }
  func.func @transform_2(%arg0: i32) -> (i32, i32) {
    %c0_i32 = arith.constant 0 : i32
    %c0_i32_0 = arith.constant 0 : i32
    %c0_i32_1 = arith.constant 0 : i32
    return %c0_i32, %c0_i32_0 : i32, i32
  }
  func.func @transform_3(%arg0: i32) -> (i32, i32) {
    %c0_i32 = arith.constant 0 : i32
    %c0_i32_0 = arith.constant 0 : i32
    %c0_i32_1 = arith.constant 0 : i32
    return %c0_i32, %c0_i32_0 : i32, i32
  }
  func.func @transform_4(%arg0: i32) -> (i32, i32) {
    %c0_i32 = arith.constant 0 : i32
    %c0_i32_0 = arith.constant 0 : i32
    %c0_i32_1 = arith.constant 0 : i32
    return %c0_i32, %c0_i32_0 : i32, i32
  }
  func.func @transform_5(%arg0: i32) -> (i32, i32) {
    %c0_i32 = arith.constant 0 : i32
    %c0_i32_0 = arith.constant 0 : i32
    %c0_i32_1 = arith.constant 0 : i32
    return %c0_i32, %c0_i32_0 : i32, i32
  }
  func.func @transform_6(%arg0: i32) -> (i32, i32) {
    %c0_i32 = arith.constant 0 : i32
    %c0_i32_0 = arith.constant 0 : i32
    %c0_i32_1 = arith.constant 0 : i32
    return %c0_i32, %c0_i32_0 : i32, i32
  }
  func.func @transform_7(%arg0: i32) -> (i32, i32) {
    %c0_i32 = arith.constant 0 : i32
    %c0_i32_0 = arith.constant 0 : i32
    %c0_i32_1 = arith.constant 0 : i32
    return %c0_i32, %c0_i32_0 : i32, i32
  }
  func.func @transform_8(%arg0: i32) -> (i32, i32) {
    %c0_i32 = arith.constant 0 : i32
    %c0_i32_0 = arith.constant 0 : i32
    %c0_i32_1 = arith.constant 0 : i32
    return %c0_i32, %c0_i32_0 : i32, i32
  }
  func.func @transform_9(%arg0: i32) -> (i32, i32) {
    %c0_i32 = arith.constant 0 : i32
    %c0_i32_0 = arith.constant 0 : i32
    return %arg0, %c0_i32 : i32, i32
  }
}

</mosaic_0001>

<bundles_post_ra>
// kernel: cnn_embedding_forward.1
= control target key start
LH: loop header
LB: loop body
LE: loop exit
PB: predicated region body
PF: predicated region fallthrough
CT: control target
= control target key end

     0   :  { %14 = vsyncpa [#allocation3], 0  ;;  %s2932_s0 = inlined_call_operand.vmem [shape: f32[8,256], index: 0, kind: input, shape index: {}]   ;;  %s2933_s1 = inlined_call_operand.hbm [shape: f32[256,1536], index: 1, kind: input, shape index: {}]   ;;  %s2934_s2 = inlined_call_operand.hbm [shape: f32[1,1536], index: 2, kind: input, shape index: {}]   ;;  %s2935_s3 = inlined_call_operand.hbm [shape: f32[384,512], index: 3, kind: input, shape index: {}]   ;;  %s2936_s4 = inlined_call_operand.hbm [shape: f32[1,512], index: 4, kind: input, shape index: {}]   ;;  %s2937_s5 = inlined_call_operand.hbm [shape: f32[128,128], index: 5, kind: input, shape index: {}]   ;;  %s2938_s6 = inlined_call_operand.hbm [shape: f32[1,128], index: 6, kind: input, shape index: {}]   ;;  %s2939_s7 = inlined_call_operand.vmem [shape: f32[128,20], index: 7, kind: input, shape index: {}]   ;;  %s2940_s8 = inlined_call_operand.hbm [shape: f32[1,20], index: 8, kind: input, shape index: {}]   ;;  %s2941_s9 = inlined_call_operand.vmem [shape: f32[8,20], index: 9, kind: output, shape index: {}]  }
   0x1   :  { %15 = vsyncpa [#allocation5], 0 }
   0x2   :  { %16 = vsyncpa [#allocation8], 0 }
   0x3   :  { %17 = vsyncpa [#allocation11], 0  ;;  %s2635_s30 = smov [#allocation4]   ;;  %s2636_s11 = smov [#allocation7]  }
   0x4   :  { %s38_s10 = sshll.u32 %s2635_s30, 4  ;;  %s60_s12 = sshll.u32 %s2636_s11, 4  ;;  %s39_s10 = int_to_ptr.vmem [resolvable:$true] %s38_s10  ;;  %s61_s12 = int_to_ptr.vmem [resolvable:$true] %s60_s12 }
   0x5   :  { %s2473_s15 = scalar_lea.hbm %s2934_s2, 192 }
   0x6   :  { %p2474_p0 = scmp.ne.s32.totalorder %s2934_s2, %s2473_s15  ;;  %p2477_p1 = scmp.lt.u32.totalorder %s2473_s15, %s2934_s2 }
   0x8   :  { %p2479_p2 = pnand %p2477_p1, %p2474_p0 }
   0xa   :  { %2482 = shalt.err (!%p2479_p2)
}
   0xb   :  { %s2483_s20 = scalar_lea.vmem %s39_s10, 192  ;;  %p2488_p4 = scmp.lt.s32.totalorder %s39_s10, %s39_s10 }
   0xc   :  { %p2484_p3 = scmp.ne.s32.totalorder %s39_s10, %s2483_s20  ;;  %p2489_p5 = scmp.lt.s32.totalorder %s2483_s20, %s2483_s20 }
   0xe   :  { %p2490_p6 = por %p2489_p5, %p2488_p4 }
  0x10   :  { %p2491_p7 = pnand %p2490_p6, %p2484_p3 }
  0x12   :  { %2494 = shalt.err (!%p2491_p7)
}
  0x13   :  { %41 = dma.hbm_to_vmem [thread:$0]  %s2934_s2, 192, %s39_s10, [#allocation5]  }
  0x14   :  { %s2495_s25 = scalar_lea.hbm %s2936_s4, 64 }
  0x15   :  { %p2496_p8 = scmp.ne.s32.totalorder %s2936_s4, %s2495_s25  ;;  %p2499_p9 = scmp.lt.u32.totalorder %s2495_s25, %s2936_s4 }
  0x17   :  { %p2501_p10 = pnand %p2499_p9, %p2496_p8 }
  0x19   :  { %2504 = shalt.err (!%p2501_p10)
}
  0x1a   :  { %s2505_s30 = scalar_lea.vmem %s61_s12, 64  ;;  %p2510_p12 = scmp.lt.s32.totalorder %s61_s12, %s61_s12 }
  0x1b   :  { %p2506_p11 = scmp.ne.s32.totalorder %s61_s12, %s2505_s30  ;;  %p2511_p13 = scmp.lt.s32.totalorder %s2505_s30, %s2505_s30 }
  0x1d   :  { %p2512_p0 = por %p2511_p13, %p2510_p12 }
  0x1f   :  { %p2513_p1 = pnand %p2512_p0, %p2506_p11 }
  0x21   :  { %2516 = shalt.err (!%p2513_p1)
}
  0x22   :  { %63 = dma.hbm_to_vmem [thread:$0]  %s2936_s4, 64, %s61_s12, [#allocation8]  }
  0x23   :  { %s2637_s11 = smov [#allocation10]   ;;  %s2638_s14 = smov [#allocation2]  }
  0x24   :  { %s82_s13 = sshll.u32 %s2637_s11, 4  ;;  %s25_s15 = sshll.u32 %s2638_s14, 4  ;;  %s83_s13 = int_to_ptr.vmem [resolvable:$true] %s82_s13  ;;  %s2725_s15 = int_to_ptr.vmem [resolvable:$true] %s25_s15 }
  0x25   :  { %s2517_s18 = scalar_lea.hbm %s2938_s6, 16 }
  0x26   :  { %p2518_p2 = scmp.ne.s32.totalorder %s2938_s6, %s2517_s18  ;;  %p2521_p3 = scmp.lt.u32.totalorder %s2517_s18, %s2938_s6 }
  0x28   :  { %p2523_p4 = pnand %p2521_p3, %p2518_p2 }
  0x2a   :  { %2526 = shalt.err (!%p2523_p4)
}
  0x2b   :  { %s2527_s4 = scalar_lea.vmem %s83_s13, 16  ;;  %s2531_s12 = scalar_lea.vmem %s83_s13, 32 }
  0x2c   :  { %p2528_p5 = scmp.ne.s32.totalorder %s83_s13, %s2527_s4  ;;  %p2532_p6 = scmp.lt.s32.totalorder %s83_s13, %s83_s13 }
  0x2d   :  { %p2533_p7 = scmp.lt.s32.totalorder %s2531_s12, %s2527_s4 }
  0x2f   :  { %p2534_p8 = por %p2533_p7, %p2532_p6 }
  0x31   :  { %p2535_p9 = pnand %p2534_p8, %p2528_p5 }
  0x33   :  { %2538 = shalt.err (!%p2535_p9)
}
  0x34   :  { %85 = dma.hbm_to_vmem [thread:$0]  %s2938_s6, 16, %s83_s13, [#allocation11]  }
  0x35   :  { %s2539_s27 = scalar_lea.hbm %s2933_s1, 49152 }
  0x36   :  { %p2540_p10 = scmp.ne.s32.totalorder %s2933_s1, %s2539_s27  ;;  %p2543_p11 = scmp.lt.u32.totalorder %s2539_s27, %s2933_s1 }
  0x38   :  { %p2545_p12 = pnand %p2543_p11, %p2540_p10 }
  0x3a   :  { %2548 = shalt.err (!%p2545_p12)
}
  0x3b   :  { %s2549_s10 = scalar_lea.vmem %s2725_s15, 49152  ;;  %p2554_p0 = scmp.lt.s32.totalorder %s2725_s15, %s2725_s15 }
  0x3c   :  { %p2550_p13 = scmp.ne.s32.totalorder %s2725_s15, %s2549_s10  ;;  %p2555_p1 = scmp.lt.s32.totalorder %s2549_s10, %s2549_s10 }
  0x3e   :  { %p2556_p2 = por %p2555_p1, %p2554_p0 }
  0x40   :  { %p2557_p3 = pnand %p2556_p2, %p2550_p13 }
  0x42   :  { %2560 = shalt.err (!%p2557_p3)
}
  0x43   :  { %s2639_s6 = smov 1536   ;;  %s2640_s11 = smov 96  }
  0x44   :  { %31 = dma.hbm_to_vmem [thread:$0]  %s2933_s1, 49152, %s2725_s15, [#allocation3], %s2639_s6, %s2639_s6, %s2640_s11  }
  0x45   :  { %s2641_s16 = smov [#allocation6]   ;;  %s2561_s20 = scalar_lea.hbm %s2935_s3, 24576 }
  0x46   :  { %s47_s17 = sshll.u32 %s2641_s16, 4  ;;  %p2562_p4 = scmp.ne.s32.totalorder %s2935_s3, %s2561_s20  ;;  %s48_s17 = int_to_ptr.vmem [resolvable:$true] %s47_s17 }
  0x47   :  { %p2565_p5 = scmp.lt.u32.totalorder %s2561_s20, %s2935_s3 }
  0x49   :  { %p2567_p6 = pnand %p2565_p5, %p2562_p4 }
  0x4b   :  { %2570 = shalt.err (!%p2567_p6)
}
  0x4c   :  { %s2571_s23 = scalar_lea.vmem %s48_s17, 24576  ;;  %p2576_p8 = scmp.lt.s32.totalorder %s48_s17, %s48_s17 }
  0x4d   :  { %p2572_p7 = scmp.ne.s32.totalorder %s48_s17, %s2571_s23  ;;  %p2577_p9 = scmp.lt.s32.totalorder %s2571_s23, %s2571_s23 }
  0x4f   :  { %p2578_p10 = por %p2577_p9, %p2576_p8 }
  0x51   :  { %p2579_p11 = pnand %p2578_p10, %p2572_p7 }
  0x53   :  { %2582 = shalt.err (!%p2579_p11)
}
  0x54   :  { %s2642_s1 = smov 512   ;;  %s2643_s15 = smov 32  }
  0x55   :  { %53 = dma.hbm_to_vmem [thread:$0]  %s2935_s3, 24576, %s48_s17, [#allocation5], %s2642_s1, %s2642_s1, %s2643_s15  }
  0x56   :  { %s2644_s26 = smov [#allocation9]   ;;  %s2583_s30 = scalar_lea.hbm %s2937_s5, 2048 }
  0x57   :  { %s69_s27 = sshll.u32 %s2644_s26, 4  ;;  %p2584_p12 = scmp.ne.s32.totalorder %s2937_s5, %s2583_s30  ;;  %s70_s27 = int_to_ptr.vmem [resolvable:$true] %s69_s27 }
  0x58   :  { %p2587_p13 = scmp.lt.u32.totalorder %s2583_s30, %s2937_s5 }
  0x5a   :  { %p2589_p0 = pnand %p2587_p13, %p2584_p12 }
  0x5c   :  { %2592 = shalt.err (!%p2589_p0)
}
  0x5d   :  { %s2593_s13 = scalar_lea.vmem %s70_s27, 2048  ;;  %p2598_p2 = scmp.lt.s32.totalorder %s70_s27, %s70_s27 }
  0x5e   :  { %p2594_p1 = scmp.ne.s32.totalorder %s70_s27, %s2593_s13  ;;  %p2599_p3 = scmp.lt.s32.totalorder %s2593_s13, %s2593_s13 }
  0x60   :  { %p2600_p4 = por %p2599_p3, %p2598_p2 }
  0x62   :  { %p2601_p5 = pnand %p2600_p4, %p2594_p1 }
  0x64   :  { %2604 = shalt.err (!%p2601_p5)
}
  0x65   :  { %s2645_s3 = smov 128   ;;  %s2646_s14 = smov 8  }
  0x66   :  { %75 = dma.hbm_to_vmem [thread:$0]  %s2937_s5, 2048, %s70_s27, [#allocation8], %s2645_s3, %s2645_s3, %s2646_s14  }
  0x67   :  { %s2647_s18 = smov [#allocation12]   ;;  %s2605_s22 = scalar_lea.hbm %s2940_s8, 16 }
  0x68   :  { %s94_s19 = sshll.u32 %s2647_s18, 4  ;;  %p2606_p6 = scmp.ne.s32.totalorder %s2940_s8, %s2605_s22  ;;  %s95_s19 = int_to_ptr.vmem [resolvable:$true] %s94_s19 }
  0x69   :  { %p2609_p7 = scmp.lt.u32.totalorder %s2605_s22, %s2940_s8 }
  0x6b   :  { %p2611_p8 = pnand %p2609_p7, %p2606_p6 }
  0x6d   :  { %2614 = shalt.err (!%p2611_p8)
}
  0x6e   :  { %s2615_s15 = scalar_lea.vmem %s95_s19, 16  ;;  %s2619_s5 = scalar_lea.vmem %s95_s19, 32 }
  0x6f   :  { %p2616_p9 = scmp.ne.s32.totalorder %s95_s19, %s2615_s15  ;;  %p2620_p10 = scmp.lt.s32.totalorder %s95_s19, %s95_s19 }
  0x70   :  { %p2621_p11 = scmp.lt.s32.totalorder %s2619_s5, %s2615_s15 }
  0x72   :  { %p2622_p12 = por %p2621_p11, %p2620_p10 }
  0x74   :  { %p2623_p13 = pnand %p2622_p12, %p2616_p9 }
  0x76   :  { %2626 = shalt.err (!%p2623_p13)
}
  0x77   :  { %97 = dma.hbm_to_vmem [thread:$0]  %s2940_s8, 16, %s95_s19, [#allocation11]  }
  0x78   :  { %2627 = dma.done.wait [#allocation3], 49152  }
  0x79   :  { %2628 = vsyncadd [#allocation3], 4294918144 }
  0x7a   :  { %2629 = dma.done.wait [#allocation5], 24768  }
  0x7b   :  { %2630 = vsyncadd [#allocation5], 4294942528 }
  0x7c   :  { %2631 = dma.done.wait [#allocation8], 2112  }
  0x7d   :  { %2632 = vsyncadd [#allocation8], 4294965184 }
  0x7e   :  { %2633 = dma.done.wait [#allocation11], 32  }
  0x7f   :  { %2634 = vsyncadd [#allocation11], 4294967264  ;;  %v122_v0 = vld [vmem:[#allocation2 + $0x8] sm:$0xff]  ;;  %v124_v2 = vld [vmem:[#allocation2 + $0x18] sm:$0xff]  ;;  %vm2650_vm0 = vmmov 0   ;;  %vm1709_vm1 = vcmask 162816  }
  0x80   :  { %v134_v1 = vld [vmem:[#allocation2 + $0x68] sm:$0xff]  ;;  %v136_v4 = vld [vmem:[#allocation2 + $0x78] sm:$0xff]  ;;  %v121_v5 = vld [vmem:[#allocation2] sm:$0xff] }
  0x81   :  { %v1825_v3 = vpack.c.bf16 %v134_v1, %v122_v0  ;;  %v133_v6 = vld [vmem:[#allocation2 + $0x60] sm:$0xff]  ;;  %v1889_v7 = vpack.c.bf16 %v136_v4, %v124_v2  ;;  %v123_v9 = vld [vmem:[#allocation2 + $0x10] sm:$0xff]  ;;  %v146_v11 = vld [vmem:[#allocation2 + $0xc8] sm:$0xff] }
  0x82   :  { %v1827_v8 = vpack.c.bf16 %v133_v6, %v121_v5  ;;  %v135_v10 = vld [vmem:[#allocation2 + $0x70] sm:$0xff]  ;;  %v158_v13 = vld [vmem:[#allocation2 + $0x128] sm:$0xff]  ;;  %v148_v14 = vld [vmem:[#allocation2 + $0xd8] sm:$0xff] }
  0x83   :  { %1826 = vmatprep.subr.bf16.mxu0 %v1825_v3  ;;  %v1891_v12 = vpack.c.bf16 %v135_v10, %v123_v9  ;;  %v160_v15 = vld [vmem:[#allocation2 + $0x138] sm:$0xff]  ;;  %1890 = vmatprep.subr.bf16.mxu1 %v1889_v7  ;;  %v1829_v16 = vpack.c.bf16 %v158_v13, %v146_v11  ;;  %v145_v18 = vld [vmem:[#allocation2 + $0xc0] sm:$0xff]  ;;  %v147_v20 = vld [vmem:[#allocation2 + $0xd0] sm:$0xff] }
  0x84   :  { %1828 = vmatpush1.bf16.msra.mxu0 %v1827_v8  ;;  %v1893_v17 = vpack.c.bf16 %v160_v15, %v148_v14  ;;  %v157_v19 = vld [vmem:[#allocation2 + $0x120] sm:$0xff]  ;;  %v159_v22 = vld [vmem:[#allocation2 + $0x130] sm:$0xff]  ;;  %v170_v23 = vld [vmem:[#allocation2 + $0x188] sm:$0xff] }
  0x85   :  { %1892 = vmatpush1.bf16.msra.mxu1 %v1891_v12  ;;  %v1831_v21 = vpack.c.bf16 %v157_v19, %v145_v18  ;;  %v182_v24 = vld [vmem:[#allocation2 + $0x1e8] sm:$0xff]  ;;  %1830 = vmatprep.subr.bf16.mxu0 %v1829_v16  ;;  %v1895_v25 = vpack.c.bf16 %v159_v22, %v147_v20  ;;  %v172_v27 = vld [vmem:[#allocation2 + $0x198] sm:$0xff]  ;;  %v169_v29 = vld [vmem:[#allocation2 + $0x180] sm:$0xff] }
  0x86   :  { %1894 = vmatprep.subr.bf16.mxu1 %v1893_v17  ;;  %v1833_v26 = vpack.c.bf16 %v182_v24, %v170_v23  ;;  %v184_v28 = vld [vmem:[#allocation2 + $0x1f8] sm:$0xff]  ;;  %v181_v31 = vld [vmem:[#allocation2 + $0x1e0] sm:$0xff]  ;;  %v171_v32 = vld [vmem:[#allocation2 + $0x190] sm:$0xff] }
  0x87   :  { %v1897_v30 = vpack.c.bf16 %v184_v28, %v172_v27  ;;  %v183_v33 = vld [vmem:[#allocation2 + $0x1f0] sm:$0xff]  ;;  %v1835_v34 = vpack.c.bf16 %v181_v31, %v169_v29  ;;  %v194_v35 = vld [vmem:[#allocation2 + $0x248] sm:$0xff]  ;;  %v196_v37 = vld [vmem:[#allocation2 + $0x258] sm:$0xff] }
  0x88   :  { %1832 = vmatpush1.bf16.msra.mxu0 %v1831_v21  ;;  %v206_v36 = vld [vmem:[#allocation2 + $0x2a8] sm:$0xff]  ;;  %v1899_v38 = vpack.c.bf16 %v183_v33, %v171_v32  ;;  %v208_v40 = vld [vmem:[#allocation2 + $0x2b8] sm:$0xff]  ;;  %v193_v41 = vld [vmem:[#allocation2 + $0x240] sm:$0xff] }
  0x89   :  { %1896 = vmatpush1.bf16.msra.mxu1 %v1895_v25  ;;  %1834 = vmatprep.subr.bf16.mxu0 %v1833_v26  ;;  %v1837_v39 = vpack.c.bf16 %v206_v36, %v194_v35  ;;  %v205_v42 = vld [vmem:[#allocation2 + $0x2a0] sm:$0xff]  ;;  %v1901_v43 = vpack.c.bf16 %v208_v40, %v196_v37  ;;  %v195_v44 = vld [vmem:[#allocation2 + $0x250] sm:$0xff]  ;;  %v218_v46 = vld [vmem:[#allocation2 + $0x308] sm:$0xff] }
  0x8a   :  { %1898 = vmatprep.subr.bf16.mxu1 %v1897_v30  ;;  %v207_v45 = vld [vmem:[#allocation2 + $0x2b0] sm:$0xff]  ;;  %v230_v47 = vld [vmem:[#allocation2 + $0x368] sm:$0xff]  ;;  %v220_v48 = vld [vmem:[#allocation2 + $0x318] sm:$0xff]  ;;  %v1839_v50 = vpack.c.bf16 %v205_v42, %v193_v41 }
  0x8b   :  { %v232_v49 = vld [vmem:[#allocation2 + $0x378] sm:$0xff]  ;;  %v1903_v51 = vpack.c.bf16 %v207_v45, %v195_v44  ;;  %v1841_v52 = vpack.c.bf16 %v230_v47, %v218_v46  ;;  %v217_v53 = vld [vmem:[#allocation2 + $0x300] sm:$0xff]  ;;  %v219_v55 = vld [vmem:[#allocation2 + $0x310] sm:$0xff] }
  0x8c   :  { %1836 = vmatpush1.bf16.msra.mxu0 %v1835_v34  ;;  %v229_v54 = vld [vmem:[#allocation2 + $0x360] sm:$0xff]  ;;  %v1905_v56 = vpack.c.bf16 %v232_v49, %v220_v48  ;;  %v231_v57 = vld [vmem:[#allocation2 + $0x370] sm:$0xff]  ;;  %v242_v58 = vld [vmem:[#allocation2 + $0x3c8] sm:$0xff] }
  0x8d   :  { %1900 = vmatpush1.bf16.msra.mxu1 %v1899_v38  ;;  %1838 = vmatprep.subr.bf16.mxu0 %v1837_v39  ;;  %v254_v59 = vld [vmem:[#allocation2 + $0x428] sm:$0xff]  ;;  %v244_v60 = vld [vmem:[#allocation2 + $0x3d8] sm:$0xff]  ;;  %v1843_v62 = vpack.c.bf16 %v229_v54, %v217_v53  ;;  %v1907_v63 = vpack.c.bf16 %v231_v57, %v219_v55  ;;  %v241_v1 = vld [vmem:[#allocation2 + $0x3c0] sm:$0xff] }
  0x8e   :  { %1902 = vmatprep.subr.bf16.mxu1 %v1901_v43  ;;  %v256_v61 = vld [vmem:[#allocation2 + $0x438] sm:$0xff]  ;;  %v1845_v0 = vpack.c.bf16 %v254_v59, %v242_v58  ;;  %v253_v2 = vld [vmem:[#allocation2 + $0x420] sm:$0xff]  ;;  %v243_v3 = vld [vmem:[#allocation2 + $0x3d0] sm:$0xff] }
  0x8f   :  { %v1909_v4 = vpack.c.bf16 %v256_v61, %v244_v60  ;;  %v255_v5 = vld [vmem:[#allocation2 + $0x430] sm:$0xff]  ;;  %v266_v6 = vld [vmem:[#allocation2 + $0x488] sm:$0xff]  ;;  %v268_v8 = vld [vmem:[#allocation2 + $0x498] sm:$0xff]  ;;  %v1847_v10 = vpack.c.bf16 %v253_v2, %v241_v1 }
  0x90   :  { %1840 = vmatpush1.bf16.msra.mxu0 %v1839_v50  ;;  %v278_v7 = vld [vmem:[#allocation2 + $0x4e8] sm:$0xff]  ;;  %v280_v9 = vld [vmem:[#allocation2 + $0x4f8] sm:$0xff]  ;;  %v1911_v11 = vpack.c.bf16 %v255_v5, %v243_v3  ;;  %v265_v13 = vld [vmem:[#allocation2 + $0x480] sm:$0xff] }
  0x91   :  { %1904 = vmatpush1.bf16.msra.mxu1 %v1903_v51  ;;  %1842 = vmatprep.subr.bf16.mxu0 %v1841_v52  ;;  %v1849_v12 = vpack.c.bf16 %v278_v7, %v266_v6  ;;  %v277_v14 = vld [vmem:[#allocation2 + $0x4e0] sm:$0xff]  ;;  %v267_v15 = vld [vmem:[#allocation2 + $0x490] sm:$0xff]  ;;  %v1913_v16 = vpack.c.bf16 %v280_v9, %v268_v8  ;;  %v290_v18 = vld [vmem:[#allocation2 + $0x548] sm:$0xff] }
  0x92   :  { %1906 = vmatprep.subr.bf16.mxu1 %v1905_v56  ;;  %v279_v17 = vld [vmem:[#allocation2 + $0x4f0] sm:$0xff]  ;;  %v302_v19 = vld [vmem:[#allocation2 + $0x5a8] sm:$0xff]  ;;  %v292_v20 = vld [vmem:[#allocation2 + $0x558] sm:$0xff]  ;;  %v1851_v22 = vpack.c.bf16 %v277_v14, %v265_v13 }
  0x93   :  { %v304_v21 = vld [vmem:[#allocation2 + $0x5b8] sm:$0xff]  ;;  %v1915_v23 = vpack.c.bf16 %v279_v17, %v267_v15  ;;  %v1853_v24 = vpack.c.bf16 %v302_v19, %v290_v18  ;;  %v289_v25 = vld [vmem:[#allocation2 + $0x540] sm:$0xff]  ;;  %v291_v27 = vld [vmem:[#allocation2 + $0x550] sm:$0xff] }
  0x94   :  { %1844 = vmatpush1.bf16.msra.mxu0 %v1843_v62  ;;  %v301_v26 = vld [vmem:[#allocation2 + $0x5a0] sm:$0xff]  ;;  %v1917_v28 = vpack.c.bf16 %v304_v21, %v292_v20  ;;  %v303_v29 = vld [vmem:[#allocation2 + $0x5b0] sm:$0xff]  ;;  %v314_v30 = vld [vmem:[#allocation2 + $0x608] sm:$0xff] }
  0x95   :  { %1908 = vmatpush1.bf16.msra.mxu1 %v1907_v63  ;;  %1846 = vmatprep.subr.bf16.mxu0 %v1845_v0  ;;  %v326_v31 = vld [vmem:[#allocation2 + $0x668] sm:$0xff]  ;;  %v316_v32 = vld [vmem:[#allocation2 + $0x618] sm:$0xff]  ;;  %v1855_v34 = vpack.c.bf16 %v301_v26, %v289_v25  ;;  %v1919_v35 = vpack.c.bf16 %v303_v29, %v291_v27  ;;  %v313_v37 = vld [vmem:[#allocation2 + $0x600] sm:$0xff] }
  0x96   :  { %1910 = vmatprep.subr.bf16.mxu1 %v1909_v4  ;;  %v328_v33 = vld [vmem:[#allocation2 + $0x678] sm:$0xff]  ;;  %v1857_v36 = vpack.c.bf16 %v326_v31, %v314_v30  ;;  %v325_v38 = vld [vmem:[#allocation2 + $0x660] sm:$0xff]  ;;  %v315_v39 = vld [vmem:[#allocation2 + $0x610] sm:$0xff] }
  0x97   :  { %v1921_v40 = vpack.c.bf16 %v328_v33, %v316_v32  ;;  %v327_v41 = vld [vmem:[#allocation2 + $0x670] sm:$0xff]  ;;  %v338_v42 = vld [vmem:[#allocation2 + $0x6c8] sm:$0xff]  ;;  %v340_v44 = vld [vmem:[#allocation2 + $0x6d8] sm:$0xff]  ;;  %v1859_v46 = vpack.c.bf16 %v325_v38, %v313_v37 }
  0x98   :  { %1848 = vmatpush1.bf16.msra.mxu0 %v1847_v10  ;;  %v350_v43 = vld [vmem:[#allocation2 + $0x728] sm:$0xff]  ;;  %v352_v45 = vld [vmem:[#allocation2 + $0x738] sm:$0xff]  ;;  %v1923_v47 = vpack.c.bf16 %v327_v41, %v315_v39  ;;  %v337_v49 = vld [vmem:[#allocation2 + $0x6c0] sm:$0xff] }
  0x99   :  { %1912 = vmatpush1.bf16.msra.mxu1 %v1911_v11  ;;  %1850 = vmatprep.subr.bf16.mxu0 %v1849_v12  ;;  %v1861_v48 = vpack.c.bf16 %v350_v43, %v338_v42  ;;  %v349_v50 = vld [vmem:[#allocation2 + $0x720] sm:$0xff]  ;;  %v339_v51 = vld [vmem:[#allocation2 + $0x6d0] sm:$0xff]  ;;  %v1925_v52 = vpack.c.bf16 %v352_v45, %v340_v44  ;;  %v362_v54 = vld [vmem:[#allocation2 + $0x788] sm:$0xff] }
  0x9a   :  { %1914 = vmatprep.subr.bf16.mxu1 %v1913_v16  ;;  %v351_v53 = vld [vmem:[#allocation2 + $0x730] sm:$0xff]  ;;  %v374_v55 = vld [vmem:[#allocation2 + $0x7e8] sm:$0xff]  ;;  %v364_v56 = vld [vmem:[#allocation2 + $0x798] sm:$0xff]  ;;  %v1863_v58 = vpack.c.bf16 %v349_v50, %v337_v49 }
  0x9b   :  { %v376_v57 = vld [vmem:[#allocation2 + $0x7f8] sm:$0xff]  ;;  %v1927_v59 = vpack.c.bf16 %v351_v53, %v339_v51  ;;  %v1865_v60 = vpack.c.bf16 %v374_v55, %v362_v54  ;;  %v361_v61 = vld [vmem:[#allocation2 + $0x780] sm:$0xff]  ;;  %v363_v63 = vld [vmem:[#allocation2 + $0x790] sm:$0xff] }
  0x9c   :  { %1852 = vmatpush1.bf16.msra.mxu0 %v1851_v22  ;;  %v373_v62 = vld [vmem:[#allocation2 + $0x7e0] sm:$0xff]  ;;  %v1929_v0 = vpack.c.bf16 %v376_v57, %v364_v56  ;;  %v375_v1 = vld [vmem:[#allocation2 + $0x7f0] sm:$0xff]  ;;  %v386_v2 = vld [vmem:[#allocation2 + $0x848] sm:$0xff] }
  0x9d   :  { %1916 = vmatpush1.bf16.msra.mxu1 %v1915_v23  ;;  %1854 = vmatprep.subr.bf16.mxu0 %v1853_v24  ;;  %v398_v3 = vld [vmem:[#allocation2 + $0x8a8] sm:$0xff]  ;;  %v388_v4 = vld [vmem:[#allocation2 + $0x858] sm:$0xff]  ;;  %v1867_v6 = vpack.c.bf16 %v373_v62, %v361_v61  ;;  %v385_v7 = vld [vmem:[#allocation2 + $0x840] sm:$0xff]  ;;  %v1931_v8 = vpack.c.bf16 %v375_v1, %v363_v63 }
  0x9e   :  { %1918 = vmatprep.subr.bf16.mxu1 %v1917_v28  ;;  %v400_v5 = vld [vmem:[#allocation2 + $0x8b8] sm:$0xff]  ;;  %v1869_v9 = vpack.c.bf16 %v398_v3, %v386_v2  ;;  %v397_v10 = vld [vmem:[#allocation2 + $0x8a0] sm:$0xff]  ;;  %v387_v11 = vld [vmem:[#allocation2 + $0x850] sm:$0xff] }
  0x9f   :  { %v399_v12 = vld [vmem:[#allocation2 + $0x8b0] sm:$0xff]  ;;  %v1933_v13 = vpack.c.bf16 %v400_v5, %v388_v4  ;;  %v410_v14 = vld [vmem:[#allocation2 + $0x908] sm:$0xff]  ;;  %v412_v17 = vld [vmem:[#allocation2 + $0x918] sm:$0xff]  ;;  %v1871_v19 = vpack.c.bf16 %v397_v10, %v385_v7 }
  0xa0   :  { %1856 = vmatpush1.bf16.msra.mxu0 %v1855_v34  ;;  %v422_v15 = vld [vmem:[#allocation2 + $0x968] sm:$0xff]  ;;  %v424_v18 = vld [vmem:[#allocation2 + $0x978] sm:$0xff]  ;;  %v1935_v20 = vpack.c.bf16 %v399_v12, %v387_v11  ;;  %v409_v22 = vld [vmem:[#allocation2 + $0x900] sm:$0xff] }
  0xa1   :  { %1920 = vmatpush1.bf16.msra.mxu1 %v1919_v35  ;;  %1858 = vmatprep.subr.bf16.mxu0 %v1857_v36  ;;  %v2795_v16 = vld [vmem:[%s2932_s0 + $0x8] sm:$0xff]  ;;  %v1873_v21 = vpack.c.bf16 %v422_v15, %v410_v14  ;;  %v421_v23 = vld [vmem:[#allocation2 + $0x960] sm:$0xff]  ;;  %v411_v24 = vld [vmem:[#allocation2 + $0x910] sm:$0xff]  ;;  %v1937_v25 = vpack.c.bf16 %v424_v18, %v412_v17 }
  0xa2   :  { %1922 = vmatprep.subr.bf16.mxu1 %v1921_v40  ;;  %633 = vmatprep.mubr.f32.mxu0 %v2795_v16  ;;  %v423_v26 = vld [vmem:[#allocation2 + $0x970] sm:$0xff]  ;;  %v434_v27 = vld [vmem:[#allocation2 + $0x9c8] sm:$0xff]  ;;  %v436_v29 = vld [vmem:[#allocation2 + $0x9d8] sm:$0xff]  ;;  %v1875_v31 = vpack.c.bf16 %v421_v23, %v409_v22 }
  0xa3   :  { %704 = vmatprep.mubr.f32.mxu1 %v2795_v16  ;;  %v446_v28 = vld [vmem:[#allocation2 + $0xa28] sm:$0xff]  ;;  %v448_v30 = vld [vmem:[#allocation2 + $0xa38] sm:$0xff]  ;;  %v1939_v32 = vpack.c.bf16 %v423_v26, %v411_v24  ;;  %v433_v34 = vld [vmem:[#allocation2 + $0x9c0] sm:$0xff] }
  0xa4   :  { %1860 = vmatpush1.bf16.msra.mxu0 %v1859_v46  ;;  %v1877_v33 = vpack.c.bf16 %v446_v28, %v434_v27  ;;  %v445_v35 = vld [vmem:[#allocation2 + $0xa20] sm:$0xff]  ;;  %v435_v36 = vld [vmem:[#allocation2 + $0x9d0] sm:$0xff]  ;;  %v1941_v37 = vpack.c.bf16 %v448_v30, %v436_v29  ;;  %v458_v39 = vld [vmem:[#allocation2 + $0xa88] sm:$0xff] }
  0xa5   :  { %1924 = vmatpush1.bf16.msra.mxu1 %v1923_v47  ;;  %1862 = vmatprep.subr.bf16.mxu0 %v1861_v48  ;;  %v447_v38 = vld [vmem:[#allocation2 + $0xa30] sm:$0xff]  ;;  %v470_v40 = vld [vmem:[#allocation2 + $0xae8] sm:$0xff]  ;;  %v460_v41 = vld [vmem:[#allocation2 + $0xa98] sm:$0xff]  ;;  %v1879_v43 = vpack.c.bf16 %v445_v35, %v433_v34 }
  0xa6   :  { %1926 = vmatprep.subr.bf16.mxu1 %v1925_v52  ;;  %v472_v42 = vld [vmem:[#allocation2 + $0xaf8] sm:$0xff]  ;;  %v1943_v44 = vpack.c.bf16 %v447_v38, %v435_v36  ;;  %v1881_v45 = vpack.c.bf16 %v470_v40, %v458_v39  ;;  %v457_v46 = vld [vmem:[#allocation2 + $0xa80] sm:$0xff]  ;;  %v459_v48 = vld [vmem:[#allocation2 + $0xa90] sm:$0xff] }
  0xa7   :  { %v469_v47 = vld [vmem:[#allocation2 + $0xae0] sm:$0xff]  ;;  %v1945_v49 = vpack.c.bf16 %v472_v42, %v460_v41  ;;  %v471_v50 = vld [vmem:[#allocation2 + $0xaf0] sm:$0xff]  ;;  %v482_v51 = vld [vmem:[#allocation2 + $0xb48] sm:$0xff] }
  0xa8   :  { %1864 = vmatpush1.bf16.msra.mxu0 %v1863_v58  ;;  %v494_v52 = vld [vmem:[#allocation2 + $0xba8] sm:$0xff]  ;;  %v484_v53 = vld [vmem:[#allocation2 + $0xb58] sm:$0xff]  ;;  %v1883_v55 = vpack.c.bf16 %v469_v47, %v457_v46  ;;  %v1947_v56 = vpack.c.bf16 %v471_v50, %v459_v48  ;;  %v481_v58 = vld [vmem:[#allocation2 + $0xb40] sm:$0xff] }
  0xa9   :  { %1928 = vmatpush1.bf16.msra.mxu1 %v1927_v59  ;;  %1866 = vmatprep.subr.bf16.mxu0 %v1865_v60  ;;  %v496_v54 = vld [vmem:[#allocation2 + $0xbb8] sm:$0xff]  ;;  %v1885_v57 = vpack.c.bf16 %v494_v52, %v482_v51  ;;  %v493_v59 = vld [vmem:[#allocation2 + $0xba0] sm:$0xff]  ;;  %v483_v60 = vld [vmem:[#allocation2 + $0xb50] sm:$0xff] }
  0xaa   :  { %1930 = vmatprep.subr.bf16.mxu1 %v1929_v0  ;;  %v1949_v61 = vpack.c.bf16 %v496_v54, %v484_v53  ;;  %v495_v62 = vld [vmem:[#allocation2 + $0xbb0] sm:$0xff]  ;;  %v126_v63 = vld [vmem:[#allocation2 + $0x28] sm:$0xff]  ;;  %v128_v1 = vld [vmem:[#allocation2 + $0x38] sm:$0xff]  ;;  %v1887_v3 = vpack.c.bf16 %v493_v59, %v481_v58 }
  0xab   :  { %v138_v0 = vld [vmem:[#allocation2 + $0x88] sm:$0xff]  ;;  %v140_v2 = vld [vmem:[#allocation2 + $0x98] sm:$0xff]  ;;  %v1951_v4 = vpack.c.bf16 %v495_v62, %v483_v60  ;;  %v137_v7 = vld [vmem:[#allocation2 + $0x80] sm:$0xff] }
  0xac   :  { %1868 = vmatpush1.bf16.msra.mxu0 %v1867_v6  ;;  %v1953_v5 = vpack.c.bf16 %v138_v0, %v126_v63  ;;  %v125_v6 = vld [vmem:[#allocation2 + $0x20] sm:$0xff]  ;;  %v139_v10 = vld [vmem:[#allocation2 + $0x90] sm:$0xff]  ;;  %v150_v11 = vld [vmem:[#allocation2 + $0xe8] sm:$0xff] }
  0xad   :  { %1932 = vmatpush1.bf16.msra.mxu1 %v1931_v8  ;;  %1870 = vmatprep.subr.bf16.mxu0 %v1869_v9  ;;  %v127_v8 = vld [vmem:[#allocation2 + $0x30] sm:$0xff]  ;;  %v2017_v9 = vpack.c.bf16 %v140_v2, %v128_v1  ;;  %v162_v12 = vld [vmem:[#allocation2 + $0x148] sm:$0xff]  ;;  %v164_v14 = vld [vmem:[#allocation2 + $0x158] sm:$0xff]  ;;  %v1955_v17 = vpack.c.bf16 %v137_v7, %v125_v6 }
  0xae   :  { %1934 = vmatprep.subr.bf16.mxu1 %v1933_v13  ;;  %v152_v13 = vld [vmem:[#allocation2 + $0xf8] sm:$0xff]  ;;  %v2802_v15 = vld [vmem:[%s2932_s0] sm:$0xff]  ;;  %v2019_v18 = vpack.c.bf16 %v139_v10, %v127_v8  ;;  %v151_v22 = vld [vmem:[#allocation2 + $0xf0] sm:$0xff] }
  0xaf   :  { %v2021_v23 = vpack.c.bf16 %v164_v14, %v152_v13  ;;  %v163_v24 = vld [vmem:[#allocation2 + $0x150] sm:$0xff]  ;;  %v186_v26 = vld [vmem:[#allocation2 + $0x208] sm:$0xff]  ;;  %v176_v27 = vld [vmem:[#allocation2 + $0x1b8] sm:$0xff] }
  0xb0   :  { %1872 = vmatpush1.bf16.msra.mxu0 %v1871_v19  ;;  %v1957_v19 = vpack.c.bf16 %v162_v12, %v150_v11  ;;  %v188_v28 = vld [vmem:[#allocation2 + $0x218] sm:$0xff]  ;;  %v2023_v30 = vpack.c.bf16 %v163_v24, %v151_v22  ;;  %v175_v34 = vld [vmem:[#allocation2 + $0x1b0] sm:$0xff]  ;;  %v210_v38 = vld [vmem:[#allocation2 + $0x2c8] sm:$0xff] }
  0xb1   :  { %1936 = vmatpush1.bf16.msra.mxu1 %v1935_v20  ;;  %1874 = vmatprep.subr.bf16.mxu0 %v1873_v21  ;;  %v149_v20 = vld [vmem:[#allocation2 + $0xe0] sm:$0xff]  ;;  %v2025_v35 = vpack.c.bf16 %v188_v28, %v176_v27  ;;  %v187_v36 = vld [vmem:[#allocation2 + $0x210] sm:$0xff]  ;;  %v200_v39 = vld [vmem:[#allocation2 + $0x278] sm:$0xff] }
  0xb2   :  { %1938 = vmatprep.subr.bf16.mxu1 %v1937_v25  ;;  %v161_v21 = vld [vmem:[#allocation2 + $0x140] sm:$0xff]  ;;  %v174_v25 = vld [vmem:[#allocation2 + $0x1a8] sm:$0xff]  ;;  %v212_v40 = vld [vmem:[#allocation2 + $0x2d8] sm:$0xff]  ;;  %v2027_v42 = vpack.c.bf16 %v187_v36, %v175_v34 }
  0xb3   :  { %v1959_v29 = vpack.c.bf16 %v161_v21, %v149_v20  ;;  %v199_v46 = vld [vmem:[#allocation2 + $0x270] sm:$0xff]  ;;  %v2029_v47 = vpack.c.bf16 %v212_v40, %v200_v39  ;;  %v234_v50 = vld [vmem:[#allocation2 + $0x388] sm:$0xff]  ;;  %v224_v51 = vld [vmem:[#allocation2 + $0x338] sm:$0xff] }
  0xb4   :  { %1876 = vmatpush1.bf16.msra.mxu0 %v1875_v31  ;;  %v1961_v31 = vpack.c.bf16 %v186_v26, %v174_v25  ;;  %v211_v48 = vld [vmem:[#allocation2 + $0x2d0] sm:$0xff]  ;;  %v236_v52 = vld [vmem:[#allocation2 + $0x398] sm:$0xff]  ;;  %v258_v62 = vld [vmem:[#allocation2 + $0x448] sm:$0xff] }
  0xb5   :  { %1940 = vmatpush1.bf16.msra.mxu1 %v1939_v32  ;;  %1878 = vmatprep.subr.bf16.mxu0 %v1877_v33  ;;  %v173_v32 = vld [vmem:[#allocation2 + $0x1a0] sm:$0xff]  ;;  %v2031_v54 = vpack.c.bf16 %v211_v48, %v199_v46  ;;  %v223_v58 = vld [vmem:[#allocation2 + $0x330] sm:$0xff]  ;;  %v2033_v59 = vpack.c.bf16 %v236_v52, %v224_v51  ;;  %v248_v63 = vld [vmem:[#allocation2 + $0x3f8] sm:$0xff] }
  0xb6   :  { %1942 = vmatprep.subr.bf16.mxu1 %v1941_v37  ;;  %v185_v33 = vld [vmem:[#allocation2 + $0x200] sm:$0xff]  ;;  %v198_v37 = vld [vmem:[#allocation2 + $0x268] sm:$0xff]  ;;  %v235_v60 = vld [vmem:[#allocation2 + $0x390] sm:$0xff] }
  0xb7   :  { %v1963_v41 = vpack.c.bf16 %v185_v33, %v173_v32  ;;  %v260_v0 = vld [vmem:[#allocation2 + $0x458] sm:$0xff]  ;;  %v2035_v2 = vpack.c.bf16 %v235_v60, %v223_v58  ;;  %v247_v6 = vld [vmem:[#allocation2 + $0x3f0] sm:$0xff]  ;;  %v282_v10 = vld [vmem:[#allocation2 + $0x508] sm:$0xff] }
  0xb8   :  { %1880 = vmatpush1.bf16.msra.mxu0 %v1879_v43  ;;  %v1965_v43 = vpack.c.bf16 %v210_v38, %v198_v37  ;;  %v2037_v7 = vpack.c.bf16 %v260_v0, %v248_v63  ;;  %v259_v8 = vld [vmem:[#allocation2 + $0x450] sm:$0xff]  ;;  %v272_v11 = vld [vmem:[#allocation2 + $0x4b8] sm:$0xff]  ;;  %v306_v24 = vld [vmem:[#allocation2 + $0x5c8] sm:$0xff] }
  0xb9   :  { %1944 = vmatpush1.bf16.msra.mxu1 %v1943_v44  ;;  %1882 = vmatprep.subr.bf16.mxu0 %v1881_v45  ;;  %v197_v44 = vld [vmem:[#allocation2 + $0x260] sm:$0xff]  ;;  %v284_v12 = vld [vmem:[#allocation2 + $0x518] sm:$0xff]  ;;  %v2039_v14 = vpack.c.bf16 %v259_v8, %v247_v6  ;;  %v271_v20 = vld [vmem:[#allocation2 + $0x4b0] sm:$0xff] }
  0xba   :  { %1946 = vmatprep.subr.bf16.mxu1 %v1945_v49  ;;  %v209_v45 = vld [vmem:[#allocation2 + $0x2c0] sm:$0xff]  ;;  %v222_v49 = vld [vmem:[#allocation2 + $0x328] sm:$0xff]  ;;  %v2041_v21 = vpack.c.bf16 %v284_v12, %v272_v11  ;;  %v283_v22 = vld [vmem:[#allocation2 + $0x510] sm:$0xff] }
  0xbb   :  { %v1967_v53 = vpack.c.bf16 %v209_v45, %v197_v44  ;;  %v296_v25 = vld [vmem:[#allocation2 + $0x578] sm:$0xff]  ;;  %v2043_v28 = vpack.c.bf16 %v283_v22, %v271_v20  ;;  %v295_v32 = vld [vmem:[#allocation2 + $0x570] sm:$0xff]  ;;  %v330_v36 = vld [vmem:[#allocation2 + $0x688] sm:$0xff] }
  0xbc   :  { %1884 = vmatpush1.bf16.msra.mxu0 %v1883_v55  ;;  %v1969_v55 = vpack.c.bf16 %v234_v50, %v222_v49  ;;  %v308_v26 = vld [vmem:[#allocation2 + $0x5d8] sm:$0xff]  ;;  %v307_v34 = vld [vmem:[#allocation2 + $0x5d0] sm:$0xff]  ;;  %v354_v48 = vld [vmem:[#allocation2 + $0x748] sm:$0xff] }
  0xbd   :  { %1948 = vmatpush1.bf16.msra.mxu1 %v1947_v56  ;;  %1886 = vmatprep.subr.bf16.mxu0 %v1885_v57  ;;  %v221_v56 = vld [vmem:[#allocation2 + $0x320] sm:$0xff]  ;;  %v2045_v33 = vpack.c.bf16 %v308_v26, %v296_v25  ;;  %v320_v37 = vld [vmem:[#allocation2 + $0x638] sm:$0xff]  ;;  %v2047_v40 = vpack.c.bf16 %v307_v34, %v295_v32  ;;  %v319_v44 = vld [vmem:[#allocation2 + $0x630] sm:$0xff] }
  0xbe   :  { %1950 = vmatprep.subr.bf16.mxu1 %v1949_v61  ;;  %v233_v57 = vld [vmem:[#allocation2 + $0x380] sm:$0xff]  ;;  %v246_v61 = vld [vmem:[#allocation2 + $0x3e8] sm:$0xff]  ;;  %v332_v38 = vld [vmem:[#allocation2 + $0x698] sm:$0xff] }
  0xbf   :  { %v1971_v1 = vpack.c.bf16 %v233_v57, %v221_v56  ;;  %v2049_v45 = vpack.c.bf16 %v332_v38, %v320_v37  ;;  %v331_v46 = vld [vmem:[#allocation2 + $0x690] sm:$0xff]  ;;  %v344_v49 = vld [vmem:[#allocation2 + $0x6f8] sm:$0xff]  ;;  %v378_v60 = vld [vmem:[#allocation2 + $0x808] sm:$0xff] }
  0xc0   :  { %1888 = vmatpush1.bf16.msra.mxu0 %v1887_v3  ;;  %v1973_v3 = vpack.c.bf16 %v258_v62, %v246_v61  ;;  %v356_v50 = vld [vmem:[#allocation2 + $0x758] sm:$0xff]  ;;  %v2051_v52 = vpack.c.bf16 %v331_v46, %v319_v44  ;;  %v343_v56 = vld [vmem:[#allocation2 + $0x6f0] sm:$0xff]  ;;  %v402_v8 = vld [vmem:[#allocation2 + $0x8c8] sm:$0xff] }
  0xc1   :  { %1952 = vmatpush1.bf16.msra.mxu1 %v1951_v4  ;;  %1954 = vmatprep.subr.bf16.mxu0 %v1953_v5  ;;  %v245_v4 = vld [vmem:[#allocation2 + $0x3e0] sm:$0xff]  ;;  %v2053_v57 = vpack.c.bf16 %v356_v50, %v344_v49  ;;  %v355_v58 = vld [vmem:[#allocation2 + $0x750] sm:$0xff]  ;;  %v368_v61 = vld [vmem:[#allocation2 + $0x7b8] sm:$0xff] }
  0xc2   :  { %2018 = vmatprep.subr.bf16.mxu1 %v2017_v9  ;;  %v257_v5 = vld [vmem:[#allocation2 + $0x440] sm:$0xff]  ;;  %v270_v9 = vld [vmem:[#allocation2 + $0x4a8] sm:$0xff]  ;;  %v380_v62 = vld [vmem:[#allocation2 + $0x818] sm:$0xff]  ;;  %v2055_v0 = vpack.c.bf16 %v355_v58, %v343_v56 }
  0xc3   :  { %634 = vmatmul.mubr.f32.vlgmr.msra.gmra.mrb[0].mxu0 %v2802_v15  ;;  %v1975_v13 = vpack.c.bf16 %v257_v5, %v245_v4  ;;  %v367_v4 = vld [vmem:[#allocation2 + $0x7b0] sm:$0xff]  ;;  %v2057_v5 = vpack.c.bf16 %v380_v62, %v368_v61  ;;  %v426_v22 = vld [vmem:[#allocation2 + $0x988] sm:$0xff] }
  0xc4   :  { %705 = vmatmul.mubr.f32.vlgmr.msra.gmra.mrb[0].mxu1 %v2802_v15  ;;  %1956 = vmatpush1.bf16.msra.mxu0 %v1955_v17  ;;  %v1977_v17 = vpack.c.bf16 %v282_v10, %v270_v9  ;;  %v379_v6 = vld [vmem:[#allocation2 + $0x810] sm:$0xff]  ;;  %v392_v9 = vld [vmem:[#allocation2 + $0x878] sm:$0xff]  ;;  %v450_v34 = vld [vmem:[#allocation2 + $0xa48] sm:$0xff] }
  0xc5   :  { %2020 = vmatpush1.bf16.msra.mxu1 %v2019_v18  ;;  %1958 = vmatprep.subr.bf16.mxu0 %v1957_v19  ;;  %v269_v18 = vld [vmem:[#allocation2 + $0x4a0] sm:$0xff]  ;;  %v404_v10 = vld [vmem:[#allocation2 + $0x8d8] sm:$0xff]  ;;  %v2059_v12 = vpack.c.bf16 %v379_v6, %v367_v4  ;;  %v403_v20 = vld [vmem:[#allocation2 + $0x8d0] sm:$0xff] }
  0xc6   :  { %2022 = vmatprep.subr.bf16.mxu1 %v2021_v23  ;;  %775 = vmatprep.mubr.f32.mxu0 %v2795_v16  ;;  %v281_v19 = vld [vmem:[#allocation2 + $0x500] sm:$0xff]  ;;  %v294_v23 = vld [vmem:[#allocation2 + $0x568] sm:$0xff]  ;;  %v427_v32 = vld [vmem:[#allocation2 + $0x990] sm:$0xff] }
  0xc7   :  { %846 = vmatprep.mubr.f32.mxu1 %v2795_v16  ;;  %v1979_v27 = vpack.c.bf16 %v281_v19, %v269_v18  ;;  %v391_v18 = vld [vmem:[#allocation2 + $0x870] sm:$0xff]  ;;  %v2061_v19 = vpack.c.bf16 %v404_v10, %v392_v9  ;;  %v474_v46 = vld [vmem:[#allocation2 + $0xb08] sm:$0xff] }
  0xc8   :  { %1960 = vmatpush1.bf16.msra.mxu0 %v1959_v29  ;;  %v1981_v29 = vpack.c.bf16 %v306_v24, %v294_v23  ;;  %v416_v23 = vld [vmem:[#allocation2 + $0x938] sm:$0xff]  ;;  %v2063_v26 = vpack.c.bf16 %v403_v20, %v391_v18  ;;  %v451_v44 = vld [vmem:[#allocation2 + $0xa50] sm:$0xff]  ;;  %v498_v58 = vld [vmem:[#allocation2 + $0xbc8] sm:$0xff] }
  0xc9   :  { %2024 = vmatpush1.bf16.msra.mxu1 %v2023_v30  ;;  %1962 = vmatprep.subr.bf16.mxu0 %v1961_v31  ;;  %v293_v30 = vld [vmem:[#allocation2 + $0x560] sm:$0xff]  ;;  %v428_v24 = vld [vmem:[#allocation2 + $0x998] sm:$0xff]  ;;  %v475_v56 = vld [vmem:[#allocation2 + $0xb10] sm:$0xff] }
  0xca   :  { %2026 = vmatprep.subr.bf16.mxu1 %v2025_v35  ;;  %v305_v31 = vld [vmem:[#allocation2 + $0x5c0] sm:$0xff]  ;;  %v318_v35 = vld [vmem:[#allocation2 + $0x628] sm:$0xff]  ;;  %v499_v4 = vld [vmem:[#allocation2 + $0xbd0] sm:$0xff] }
  0xcb   :  { %v1983_v39 = vpack.c.bf16 %v305_v31, %v293_v30  ;;  %v415_v30 = vld [vmem:[#allocation2 + $0x930] sm:$0xff]  ;;  %v2065_v31 = vpack.c.bf16 %v428_v24, %v416_v23  ;;  %v142_v6 = vld [vmem:[#allocation2 + $0xa8] sm:$0xff] }
  0xcc   :  { %1964 = vmatpush1.bf16.msra.mxu0 %v1963_v41  ;;  %v1985_v41 = vpack.c.bf16 %v330_v36, %v318_v35  ;;  %v440_v35 = vld [vmem:[#allocation2 + $0x9f8] sm:$0xff]  ;;  %v2067_v38 = vpack.c.bf16 %v427_v32, %v415_v30  ;;  %v143_v18 = vld [vmem:[#allocation2 + $0xb0] sm:$0xff]  ;;  %v166_v20 = vld [vmem:[#allocation2 + $0x168] sm:$0xff] }
  0xcd   :  { %2028 = vmatpush1.bf16.msra.mxu1 %v2027_v42  ;;  %1966 = vmatprep.subr.bf16.mxu0 %v1965_v43  ;;  %v317_v42 = vld [vmem:[#allocation2 + $0x620] sm:$0xff]  ;;  %v452_v36 = vld [vmem:[#allocation2 + $0xa58] sm:$0xff]  ;;  %v167_v30 = vld [vmem:[#allocation2 + $0x170] sm:$0xff] }
  0xce   :  { %2030 = vmatprep.subr.bf16.mxu1 %v2029_v47  ;;  %v329_v43 = vld [vmem:[#allocation2 + $0x680] sm:$0xff]  ;;  %v342_v47 = vld [vmem:[#allocation2 + $0x6e8] sm:$0xff] }
  0xcf   :  { %v1987_v51 = vpack.c.bf16 %v329_v43, %v317_v42  ;;  %v439_v42 = vld [vmem:[#allocation2 + $0x9f0] sm:$0xff]  ;;  %v2069_v43 = vpack.c.bf16 %v452_v36, %v440_v35  ;;  %v190_v32 = vld [vmem:[#allocation2 + $0x228] sm:$0xff] }
  0xd0   :  { %1968 = vmatpush1.bf16.msra.mxu0 %v1967_v53  ;;  %v1989_v53 = vpack.c.bf16 %v354_v48, %v342_v47  ;;  %v464_v47 = vld [vmem:[#allocation2 + $0xab8] sm:$0xff]  ;;  %v2071_v50 = vpack.c.bf16 %v451_v44, %v439_v42  ;;  %v191_v42 = vld [vmem:[#allocation2 + $0x230] sm:$0xff]  ;;  %v214_v44 = vld [vmem:[#allocation2 + $0x2e8] sm:$0xff] }
  0xd1   :  { %2032 = vmatpush1.bf16.msra.mxu1 %v2031_v54  ;;  %1970 = vmatprep.subr.bf16.mxu0 %v1969_v55  ;;  %v341_v54 = vld [vmem:[#allocation2 + $0x6e0] sm:$0xff]  ;;  %v476_v48 = vld [vmem:[#allocation2 + $0xb18] sm:$0xff] }
  0xd2   :  { %2034 = vmatprep.subr.bf16.mxu1 %v2033_v59  ;;  %v353_v55 = vld [vmem:[#allocation2 + $0x740] sm:$0xff]  ;;  %v366_v59 = vld [vmem:[#allocation2 + $0x7a8] sm:$0xff] }
  0xd3   :  { %v1991_v63 = vpack.c.bf16 %v353_v55, %v341_v54  ;;  %v463_v54 = vld [vmem:[#allocation2 + $0xab0] sm:$0xff]  ;;  %v2073_v55 = vpack.c.bf16 %v476_v48, %v464_v47 }
  0xd4   :  { %1972 = vmatpush1.bf16.msra.mxu0 %v1971_v1  ;;  %v1993_v1 = vpack.c.bf16 %v378_v60, %v366_v59  ;;  %v488_v59 = vld [vmem:[#allocation2 + $0xb78] sm:$0xff]  ;;  %v2075_v62 = vpack.c.bf16 %v475_v56, %v463_v54  ;;  %v215_v54 = vld [vmem:[#allocation2 + $0x2f0] sm:$0xff]  ;;  %v238_v56 = vld [vmem:[#allocation2 + $0x3a8] sm:$0xff] }
  0xd5   :  { %2036 = vmatpush1.bf16.msra.mxu1 %v2035_v2  ;;  %1974 = vmatprep.subr.bf16.mxu0 %v1973_v3  ;;  %v365_v2 = vld [vmem:[#allocation2 + $0x7a0] sm:$0xff]  ;;  %v500_v60 = vld [vmem:[#allocation2 + $0xbd8] sm:$0xff] }
  0xd6   :  { %2038 = vmatprep.subr.bf16.mxu1 %v2037_v7  ;;  %v377_v3 = vld [vmem:[#allocation2 + $0x800] sm:$0xff]  ;;  %v390_v7 = vld [vmem:[#allocation2 + $0x868] sm:$0xff] }
  0xd7   :  { %v1995_v11 = vpack.c.bf16 %v377_v3, %v365_v2  ;;  %v487_v2 = vld [vmem:[#allocation2 + $0xb70] sm:$0xff]  ;;  %v2077_v3 = vpack.c.bf16 %v500_v60, %v488_v59 }
  0xd8   :  { %1976 = vmatpush1.bf16.msra.mxu0 %v1975_v13  ;;  %v1997_v13 = vpack.c.bf16 %v402_v8, %v390_v7  ;;  %v132_v7 = vld [vmem:[#allocation2 + $0x58] sm:$0xff]  ;;  %v2079_v10 = vpack.c.bf16 %v499_v4, %v487_v2  ;;  %v250_v2 = vld [vmem:[#allocation2 + $0x408] sm:$0xff] }
  0xd9   :  { %2040 = vmatpush1.bf16.msra.mxu1 %v2039_v14  ;;  %1978 = vmatprep.subr.bf16.mxu0 %v1977_v17  ;;  %v389_v14 = vld [vmem:[#allocation2 + $0x860] sm:$0xff]  ;;  %v144_v8 = vld [vmem:[#allocation2 + $0xb8] sm:$0xff] }
  0xda   :  { %2042 = vmatprep.subr.bf16.mxu1 %v2041_v21  ;;  %v401_v17 = vld [vmem:[#allocation2 + $0x8c0] sm:$0xff]  ;;  %v414_v21 = vld [vmem:[#allocation2 + $0x928] sm:$0xff]  ;;  %v252_v4 = vld [vmem:[#allocation2 + $0x418] sm:$0xff] }
  0xdb   :  { %v1999_v25 = vpack.c.bf16 %v401_v17, %v389_v14  ;;  %v131_v14 = vld [vmem:[#allocation2 + $0x50] sm:$0xff]  ;;  %v2145_v17 = vpack.c.bf16 %v144_v8, %v132_v7 }
  0xdc   :  { %1980 = vmatpush1.bf16.msra.mxu0 %v1979_v27  ;;  %v2001_v27 = vpack.c.bf16 %v426_v22, %v414_v21  ;;  %v156_v21 = vld [vmem:[#allocation2 + $0x118] sm:$0xff]  ;;  %v2147_v24 = vpack.c.bf16 %v143_v18, %v131_v14  ;;  %v274_v14 = vld [vmem:[#allocation2 + $0x4c8] sm:$0xff] }
  0xdd   :  { %2044 = vmatpush1.bf16.msra.mxu1 %v2043_v28  ;;  %1982 = vmatprep.subr.bf16.mxu0 %v1981_v29  ;;  %v413_v28 = vld [vmem:[#allocation2 + $0x920] sm:$0xff]  ;;  %v168_v22 = vld [vmem:[#allocation2 + $0x178] sm:$0xff] }
  0xde   :  { %2046 = vmatprep.subr.bf16.mxu1 %v2045_v33  ;;  %v425_v29 = vld [vmem:[#allocation2 + $0x980] sm:$0xff]  ;;  %v438_v33 = vld [vmem:[#allocation2 + $0x9e8] sm:$0xff]  ;;  %v276_v18 = vld [vmem:[#allocation2 + $0x4d8] sm:$0xff] }
  0xdf   :  { %v2003_v37 = vpack.c.bf16 %v425_v29, %v413_v28  ;;  %v155_v28 = vld [vmem:[#allocation2 + $0x110] sm:$0xff]  ;;  %v2149_v29 = vpack.c.bf16 %v168_v22, %v156_v21 }
  0xe0   :  { %1984 = vmatpush1.bf16.msra.mxu0 %v1983_v39  ;;  %v2005_v39 = vpack.c.bf16 %v450_v34, %v438_v33  ;;  %v180_v33 = vld [vmem:[#allocation2 + $0x1d8] sm:$0xff]  ;;  %v2151_v36 = vpack.c.bf16 %v167_v30, %v155_v28  ;;  %v298_v28 = vld [vmem:[#allocation2 + $0x588] sm:$0xff] }
  0xe1   :  { %2048 = vmatpush1.bf16.msra.mxu1 %v2047_v40  ;;  %1986 = vmatprep.subr.bf16.mxu0 %v1985_v41  ;;  %v437_v40 = vld [vmem:[#allocation2 + $0x9e0] sm:$0xff]  ;;  %v192_v34 = vld [vmem:[#allocation2 + $0x238] sm:$0xff] }
  0xe2   :  { %2050 = vmatprep.subr.bf16.mxu1 %v2049_v45  ;;  %v449_v41 = vld [vmem:[#allocation2 + $0xa40] sm:$0xff]  ;;  %v462_v45 = vld [vmem:[#allocation2 + $0xaa8] sm:$0xff]  ;;  %v300_v30 = vld [vmem:[#allocation2 + $0x598] sm:$0xff] }
  0xe3   :  { %v2007_v49 = vpack.c.bf16 %v449_v41, %v437_v40  ;;  %v179_v40 = vld [vmem:[#allocation2 + $0x1d0] sm:$0xff]  ;;  %v2153_v41 = vpack.c.bf16 %v192_v34, %v180_v33 }
  0xe4   :  { %1988 = vmatpush1.bf16.msra.mxu0 %v1987_v51  ;;  %v2009_v51 = vpack.c.bf16 %v474_v46, %v462_v45  ;;  %v204_v45 = vld [vmem:[#allocation2 + $0x298] sm:$0xff]  ;;  %v2155_v48 = vpack.c.bf16 %v191_v42, %v179_v40  ;;  %v322_v40 = vld [vmem:[#allocation2 + $0x648] sm:$0xff] }
  0xe5   :  { %2052 = vmatpush1.bf16.msra.mxu1 %v2051_v52  ;;  %1990 = vmatprep.subr.bf16.mxu0 %v1989_v53  ;;  %v461_v52 = vld [vmem:[#allocation2 + $0xaa0] sm:$0xff]  ;;  %v216_v46 = vld [vmem:[#allocation2 + $0x2f8] sm:$0xff] }
  0xe6   :  { %2054 = vmatprep.subr.bf16.mxu1 %v2053_v57  ;;  %v473_v53 = vld [vmem:[#allocation2 + $0xb00] sm:$0xff]  ;;  %v486_v57 = vld [vmem:[#allocation2 + $0xb68] sm:$0xff]  ;;  %v324_v42 = vld [vmem:[#allocation2 + $0x658] sm:$0xff] }
  0xe7   :  { %v2011_v61 = vpack.c.bf16 %v473_v53, %v461_v52  ;;  %v203_v52 = vld [vmem:[#allocation2 + $0x290] sm:$0xff]  ;;  %v2157_v53 = vpack.c.bf16 %v216_v46, %v204_v45 }
  0xe8   :  { %1992 = vmatpush1.bf16.msra.mxu0 %v1991_v63  ;;  %v2013_v63 = vpack.c.bf16 %v498_v58, %v486_v57  ;;  %v228_v57 = vld [vmem:[#allocation2 + $0x358] sm:$0xff] }
  0xe9   :  { %2056 = vmatpush1.bf16.msra.mxu1 %v2055_v0  ;;  %1994 = vmatprep.subr.bf16.mxu0 %v1993_v1  ;;  %v485_v0 = vld [vmem:[#allocation2 + $0xb60] sm:$0xff]  ;;  %v240_v58 = vld [vmem:[#allocation2 + $0x3b8] sm:$0xff] }
  0xea   :  { %2058 = vmatprep.subr.bf16.mxu1 %v2057_v5  ;;  %v497_v1 = vld [vmem:[#allocation2 + $0xbc0] sm:$0xff]  ;;  %v130_v5 = vld [vmem:[#allocation2 + $0x48] sm:$0xff] }
  0xeb   :  { %v2015_v9 = vpack.c.bf16 %v497_v1, %v485_v0  ;;  %v2161_v0 = vpack.c.bf16 %v240_v58, %v228_v57  ;;  %v239_v1 = vld [vmem:[#allocation2 + $0x3b0] sm:$0xff] }
  0xec   :  { %1996 = vmatpush1.bf16.msra.mxu0 %v1995_v11  ;;  %v2081_v11 = vpack.c.bf16 %v142_v6, %v130_v5  ;;  %v264_v5 = vld [vmem:[#allocation2 + $0x478] sm:$0xff] }
  0xed   :  { %2060 = vmatpush1.bf16.msra.mxu1 %v2059_v12  ;;  %1998 = vmatprep.subr.bf16.mxu0 %v1997_v13  ;;  %v129_v12 = vld [vmem:[#allocation2 + $0x40] sm:$0xff] }
  0xee   :  { %2062 = vmatprep.subr.bf16.mxu1 %v2061_v19  ;;  %v141_v13 = vld [vmem:[#allocation2 + $0xa0] sm:$0xff]  ;;  %v154_v19 = vld [vmem:[#allocation2 + $0x108] sm:$0xff] }
  0xef   :  { %v2083_v23 = vpack.c.bf16 %v141_v13, %v129_v12  ;;  %v2165_v12 = vpack.c.bf16 %v264_v5, %v252_v4  ;;  %v263_v13 = vld [vmem:[#allocation2 + $0x470] sm:$0xff] }
  0xf0   :  { %2000 = vmatpush1.bf16.msra.mxu0 %v1999_v25  ;;  %v2085_v25 = vpack.c.bf16 %v166_v20, %v154_v19  ;;  %v288_v19 = vld [vmem:[#allocation2 + $0x538] sm:$0xff] }
  0xf1   :  { %2064 = vmatpush1.bf16.msra.mxu1 %v2063_v26  ;;  %2002 = vmatprep.subr.bf16.mxu0 %v2001_v27  ;;  %v153_v26 = vld [vmem:[#allocation2 + $0x100] sm:$0xff] }
  0xf2   :  { %2066 = vmatprep.subr.bf16.mxu1 %v2065_v31  ;;  %v165_v27 = vld [vmem:[#allocation2 + $0x160] sm:$0xff]  ;;  %v178_v31 = vld [vmem:[#allocation2 + $0x1c8] sm:$0xff] }
  0xf3   :  { %v2087_v35 = vpack.c.bf16 %v165_v27, %v153_v26  ;;  %v2169_v26 = vpack.c.bf16 %v288_v19, %v276_v18  ;;  %v287_v27 = vld [vmem:[#allocation2 + $0x530] sm:$0xff] }
  0xf4   :  { %2004 = vmatpush1.bf16.msra.mxu0 %v2003_v37  ;;  %v2089_v37 = vpack.c.bf16 %v190_v32, %v178_v31  ;;  %v312_v31 = vld [vmem:[#allocation2 + $0x5f8] sm:$0xff] }
  0xf5   :  { %2068 = vmatpush1.bf16.msra.mxu1 %v2067_v38  ;;  %2006 = vmatprep.subr.bf16.mxu0 %v2005_v39  ;;  %v177_v38 = vld [vmem:[#allocation2 + $0x1c0] sm:$0xff] }
  0xf6   :  { %2070 = vmatprep.subr.bf16.mxu1 %v2069_v43  ;;  %v189_v39 = vld [vmem:[#allocation2 + $0x220] sm:$0xff]  ;;  %v202_v43 = vld [vmem:[#allocation2 + $0x288] sm:$0xff] }
  0xf7   :  { %v2091_v47 = vpack.c.bf16 %v189_v39, %v177_v38  ;;  %v2173_v38 = vpack.c.bf16 %v312_v31, %v300_v30  ;;  %v311_v39 = vld [vmem:[#allocation2 + $0x5f0] sm:$0xff] }
  0xf8   :  { %2008 = vmatpush1.bf16.msra.mxu0 %v2007_v49  ;;  %v2093_v49 = vpack.c.bf16 %v214_v44, %v202_v43  ;;  %v336_v43 = vld [vmem:[#allocation2 + $0x6b8] sm:$0xff] }
  0xf9   :  { %2072 = vmatpush1.bf16.msra.mxu1 %v2071_v50  ;;  %2010 = vmatprep.subr.bf16.mxu0 %v2009_v51  ;;  %v201_v50 = vld [vmem:[#allocation2 + $0x280] sm:$0xff] }
  0xfa   :  { %2074 = vmatprep.subr.bf16.mxu1 %v2073_v55  ;;  %v213_v51 = vld [vmem:[#allocation2 + $0x2e0] sm:$0xff]  ;;  %v226_v55 = vld [vmem:[#allocation2 + $0x348] sm:$0xff] }
  0xfb   :  { %v2095_v59 = vpack.c.bf16 %v213_v51, %v201_v50  ;;  %v2097_v60 = vpack.c.bf16 %v238_v56, %v226_v55  ;;  %v2177_v50 = vpack.c.bf16 %v336_v43, %v324_v42  ;;  %v335_v51 = vld [vmem:[#allocation2 + $0x6b0] sm:$0xff]  ;;  %v360_v55 = vld [vmem:[#allocation2 + $0x778] sm:$0xff] }
  0xfc   :  { %2012 = vmatpush1.bf16.msra.mxu0 %v2011_v61  ;;  %v225_v61 = vld [vmem:[#allocation2 + $0x340] sm:$0xff] }
  0xfd   :  { %2076 = vmatpush1.bf16.msra.mxu1 %v2075_v62  ;;  %2014 = vmatprep.subr.bf16.mxu0 %v2013_v63  ;;  %v237_v62 = vld [vmem:[#allocation2 + $0x3a0] sm:$0xff]  ;;  %v227_v63 = vld [vmem:[#allocation2 + $0x350] sm:$0xff] }
  0xfe   :  { %2078 = vmatprep.subr.bf16.mxu1 %v2077_v3  ;;  %v262_v3 = vld [vmem:[#allocation2 + $0x468] sm:$0xff]  ;;  %v2099_v6 = vpack.c.bf16 %v237_v62, %v225_v61  ;;  %v2163_v7 = vpack.c.bf16 %v239_v1, %v227_v63  ;;  %v359_v62 = vld [vmem:[#allocation2 + $0x770] sm:$0xff]  ;;  %v372_v1 = vld [vmem:[#allocation2 + $0x7d8] sm:$0xff] }
  0xff   :  { %v2101_v8 = vpack.c.bf16 %v262_v3, %v250_v2  ;;  %v370_v63 = vld [vmem:[#allocation2 + $0x7c8] sm:$0xff]  ;;  %v384_v2 = vld [vmem:[#allocation2 + $0x838] sm:$0xff] }
 0x100   :  { %2016 = vmatpush1.bf16.msra.mxu0 %v2015_v9  ;;  %v249_v9 = vld [vmem:[#allocation2 + $0x400] sm:$0xff] }
 0x101   :  { %2080 = vmatpush1.bf16.msra.mxu1 %v2079_v10  ;;  %2082 = vmatprep.subr.bf16.mxu0 %v2081_v11  ;;  %v261_v10 = vld [vmem:[#allocation2 + $0x460] sm:$0xff]  ;;  %v251_v11 = vld [vmem:[#allocation2 + $0x410] sm:$0xff] }
 0x102   :  { %2146 = vmatprep.subr.bf16.mxu1 %v2145_v17  ;;  %v286_v17 = vld [vmem:[#allocation2 + $0x528] sm:$0xff]  ;;  %v2103_v20 = vpack.c.bf16 %v261_v10, %v249_v9  ;;  %v2167_v21 = vpack.c.bf16 %v263_v13, %v251_v11  ;;  %v2185_v9 = vpack.c.bf16 %v384_v2, %v372_v1  ;;  %v383_v10 = vld [vmem:[#allocation2 + $0x830] sm:$0xff]  ;;  %v396_v13 = vld [vmem:[#allocation2 + $0x898] sm:$0xff] }
 0x103   :  { %776 = vmatmul.mubr.f32.vlgmr.msra.gmra.mrb[2].mxu0 %v2802_v15  ;;  %v2105_v22 = vpack.c.bf16 %v286_v17, %v274_v14  ;;  %v394_v11 = vld [vmem:[#allocation2 + $0x888] sm:$0xff]  ;;  %v408_v14 = vld [vmem:[#allocation2 + $0x8f8] sm:$0xff] }
 0x104   :  { %847 = vmatmul.mubr.f32.vlgmr.msra.gmra.mrb[2].mxu1 %v2802_v15  ;;  %2084 = vmatpush1.bf16.msra.mxu0 %v2083_v23  ;;  %v273_v23 = vld [vmem:[#allocation2 + $0x4c0] sm:$0xff] }
 0x105   :  { %2148 = vmatpush1.bf16.msra.mxu1 %v2147_v24  ;;  %2086 = vmatprep.subr.bf16.mxu0 %v2085_v25  ;;  %v285_v24 = vld [vmem:[#allocation2 + $0x520] sm:$0xff]  ;;  %v275_v25 = vld [vmem:[#allocation2 + $0x4d0] sm:$0xff] }
 0x106   :  { %2150 = vmatprep.subr.bf16.mxu1 %v2149_v29  ;;  %917 = vmatprep.mubr.f32.mxu0 %v2795_v16  ;;  %v310_v29 = vld [vmem:[#allocation2 + $0x5e8] sm:$0xff]  ;;  %v2107_v32 = vpack.c.bf16 %v285_v24, %v273_v23  ;;  %v2171_v33 = vpack.c.bf16 %v287_v27, %v275_v25  ;;  %v2189_v23 = vpack.c.bf16 %v408_v14, %v396_v13  ;;  %v407_v24 = vld [vmem:[#allocation2 + $0x8f0] sm:$0xff]  ;;  %v420_v27 = vld [vmem:[#allocation2 + $0x958] sm:$0xff] }
 0x107   :  { %988 = vmatprep.mubr.f32.mxu1 %v2795_v16  ;;  %v2159_v16 = vpack.c.bf16 %v215_v54, %v203_v52  ;;  %v2109_v34 = vpack.c.bf16 %v310_v29, %v298_v28  ;;  %v346_v52 = vld [vmem:[#allocation2 + $0x708] sm:$0xff]  ;;  %v348_v54 = vld [vmem:[#allocation2 + $0x718] sm:$0xff] }
 0x108   :  { %2088 = vmatpush1.bf16.msra.mxu0 %v2087_v35  ;;  %v297_v35 = vld [vmem:[#allocation2 + $0x580] sm:$0xff]  ;;  %v2181_v61 = vpack.c.bf16 %v360_v55, %v348_v54  ;;  %v418_v25 = vld [vmem:[#allocation2 + $0x948] sm:$0xff]  ;;  %v432_v28 = vld [vmem:[#allocation2 + $0x9b8] sm:$0xff] }
 0x109   :  { %2152 = vmatpush1.bf16.msra.mxu1 %v2151_v36  ;;  %2090 = vmatprep.subr.bf16.mxu0 %v2089_v37  ;;  %v309_v36 = vld [vmem:[#allocation2 + $0x5e0] sm:$0xff]  ;;  %v299_v37 = vld [vmem:[#allocation2 + $0x590] sm:$0xff] }
 0x10a   :  { %2154 = vmatprep.subr.bf16.mxu1 %v2153_v41  ;;  %v334_v41 = vld [vmem:[#allocation2 + $0x6a8] sm:$0xff]  ;;  %v2111_v44 = vpack.c.bf16 %v309_v36, %v297_v35  ;;  %v2175_v45 = vpack.c.bf16 %v311_v39, %v299_v37  ;;  %v2193_v35 = vpack.c.bf16 %v432_v28, %v420_v27  ;;  %v431_v36 = vld [vmem:[#allocation2 + $0x9b0] sm:$0xff]  ;;  %v444_v39 = vld [vmem:[#allocation2 + $0xa18] sm:$0xff] }
 0x10b   :  { %v2113_v46 = vpack.c.bf16 %v334_v41, %v322_v40  ;;  %v442_v37 = vld [vmem:[#allocation2 + $0xa08] sm:$0xff]  ;;  %v456_v40 = vld [vmem:[#allocation2 + $0xa78] sm:$0xff] }
 0x10c   :  { %2092 = vmatpush1.bf16.msra.mxu0 %v2091_v47  ;;  %v321_v47 = vld [vmem:[#allocation2 + $0x640] sm:$0xff] }
 0x10d   :  { %2156 = vmatpush1.bf16.msra.mxu1 %v2155_v48  ;;  %2094 = vmatprep.subr.bf16.mxu0 %v2093_v49  ;;  %v333_v48 = vld [vmem:[#allocation2 + $0x6a0] sm:$0xff]  ;;  %v323_v49 = vld [vmem:[#allocation2 + $0x650] sm:$0xff] }
 0x10e   :  { %2158 = vmatprep.subr.bf16.mxu1 %v2157_v53  ;;  %v358_v53 = vld [vmem:[#allocation2 + $0x768] sm:$0xff]  ;;  %v2115_v56 = vpack.c.bf16 %v333_v48, %v321_v47  ;;  %v2179_v57 = vpack.c.bf16 %v335_v51, %v323_v49  ;;  %v2197_v47 = vpack.c.bf16 %v456_v40, %v444_v39  ;;  %v455_v48 = vld [vmem:[#allocation2 + $0xa70] sm:$0xff]  ;;  %v468_v51 = vld [vmem:[#allocation2 + $0xad8] sm:$0xff] }
 0x10f   :  { %v2117_v58 = vpack.c.bf16 %v358_v53, %v346_v52  ;;  %v466_v49 = vld [vmem:[#allocation2 + $0xac8] sm:$0xff]  ;;  %v480_v52 = vld [vmem:[#allocation2 + $0xb38] sm:$0xff] }
 0x110   :  { %2096 = vmatpush1.bf16.msra.mxu0 %v2095_v59  ;;  %v345_v59 = vld [vmem:[#allocation2 + $0x700] sm:$0xff]  ;;  %v1032_v40 = vld [vmem:[#allocation6 + $0x80] sm:$0xff] }
 0x111   :  { %2160 = vmatpush1.bf16.msra.mxu1 %v2159_v16  ;;  %2098 = vmatprep.subr.bf16.mxu0 %v2097_v60  ;;  %v357_v16 = vld [vmem:[#allocation2 + $0x760] sm:$0xff]  ;;  %v347_v60 = vld [vmem:[#allocation2 + $0x710] sm:$0xff] }
 0x112   :  { %2162 = vmatprep.subr.bf16.mxu1 %v2161_v0  ;;  %v382_v0 = vld [vmem:[#allocation2 + $0x828] sm:$0xff]  ;;  %v2119_v3 = vpack.c.bf16 %v357_v16, %v345_v59  ;;  %v2183_v4 = vpack.c.bf16 %v359_v62, %v347_v60  ;;  %v2201_v59 = vpack.c.bf16 %v480_v52, %v468_v51  ;;  %v479_v16 = vld [vmem:[#allocation2 + $0xb30] sm:$0xff]  ;;  %v492_v62 = vld [vmem:[#allocation2 + $0xb98] sm:$0xff] }
 0x113   :  { %v2121_v5 = vpack.c.bf16 %v382_v0, %v370_v63  ;;  %v490_v60 = vld [vmem:[#allocation2 + $0xb88] sm:$0xff]  ;;  %v504_v63 = vld [vmem:[#allocation2 + $0xbf8] sm:$0xff] }
 0x114   :  { %2100 = vmatpush1.bf16.msra.mxu0 %v2099_v6  ;;  %v369_v6 = vld [vmem:[#allocation2 + $0x7c0] sm:$0xff]  ;;  %v1040_v52 = vld [vmem:[#allocation6 + $0xc0] sm:$0xff] }
 0x115   :  { %2164 = vmatpush1.bf16.msra.mxu1 %v2163_v7  ;;  %2102 = vmatprep.subr.bf16.mxu0 %v2101_v8  ;;  %v381_v7 = vld [vmem:[#allocation2 + $0x820] sm:$0xff]  ;;  %v371_v8 = vld [vmem:[#allocation2 + $0x7d0] sm:$0xff] }
 0x116   :  { %2166 = vmatprep.subr.bf16.mxu1 %v2165_v12  ;;  %v406_v12 = vld [vmem:[#allocation2 + $0x8e8] sm:$0xff]  ;;  %v2123_v17 = vpack.c.bf16 %v381_v7, %v369_v6  ;;  %v2187_v18 = vpack.c.bf16 %v383_v10, %v371_v8  ;;  %v491_v6 = vld [vmem:[#allocation2 + $0xb90] sm:$0xff] }
 0x117   :  { %v2125_v19 = vpack.c.bf16 %v406_v12, %v394_v11  ;;  %v503_v7 = vld [vmem:[#allocation2 + $0xbf0] sm:$0xff]  ;;  %v1019_v12 = vld [vmem:[#allocation6 + $0x18] sm:$0xff] }
 0x118   :  { %2104 = vmatpush1.bf16.msra.mxu0 %v2103_v20  ;;  %v393_v20 = vld [vmem:[#allocation2 + $0x880] sm:$0xff]  ;;  %v1017_v10 = vld [vmem:[#allocation6 + $0x8] sm:$0xff] }
 0x119   :  { %2168 = vmatpush1.bf16.msra.mxu1 %v2167_v21  ;;  %2106 = vmatprep.subr.bf16.mxu0 %v2105_v22  ;;  %v405_v21 = vld [vmem:[#allocation2 + $0x8e0] sm:$0xff]  ;;  %v395_v22 = vld [vmem:[#allocation2 + $0x890] sm:$0xff] }
 0x11a   :  { %2170 = vmatprep.subr.bf16.mxu1 %v2169_v26  ;;  %v430_v26 = vld [vmem:[#allocation2 + $0x9a8] sm:$0xff]  ;;  %v2127_v29 = vpack.c.bf16 %v405_v21, %v393_v20  ;;  %v2191_v30 = vpack.c.bf16 %v407_v24, %v395_v22  ;;  %v1021_v11 = vld [vmem:[#allocation6 + $0x28] sm:$0xff]  ;;  %v1018_v21 = vld [vmem:[#allocation6 + $0x10] sm:$0xff] }
 0x11b   :  { %v2129_v31 = vpack.c.bf16 %v430_v26, %v418_v25  ;;  %v2209_v13 = vpack.c.bf16 %v1021_v11, %v1017_v10  ;;  %v1023_v14 = vld [vmem:[#allocation6 + $0x38] sm:$0xff]  ;;  %v1022_v22 = vld [vmem:[#allocation6 + $0x30] sm:$0xff]  ;;  %v1029_v25 = vld [vmem:[#allocation6 + $0x68] sm:$0xff] }
 0x11c   :  { %2108 = vmatpush1.bf16.msra.mxu0 %v2107_v32  ;;  %v417_v32 = vld [vmem:[#allocation2 + $0x940] sm:$0xff]  ;;  %v2307_v24 = vpack.c.bf16 %v1022_v22, %v1018_v21  ;;  %v1056_v11 = vld [vmem:[#allocation6 + $0x140] sm:$0xff] }
 0x11d   :  { %2172 = vmatpush1.bf16.msra.mxu1 %v2171_v33  ;;  %2110 = vmatprep.subr.bf16.mxu0 %v2109_v34  ;;  %v429_v33 = vld [vmem:[#allocation2 + $0x9a0] sm:$0xff]  ;;  %v419_v34 = vld [vmem:[#allocation2 + $0x950] sm:$0xff] }
 0x11e   :  { %2174 = vmatprep.subr.bf16.mxu1 %v2173_v38  ;;  %v454_v38 = vld [vmem:[#allocation2 + $0xa68] sm:$0xff]  ;;  %v2131_v41 = vpack.c.bf16 %v429_v33, %v417_v32  ;;  %v2195_v42 = vpack.c.bf16 %v431_v36, %v419_v34  ;;  %v1030_v33 = vld [vmem:[#allocation6 + $0x70] sm:$0xff]  ;;  %v1033_v34 = vld [vmem:[#allocation6 + $0x88] sm:$0xff] }
 0x11f   :  { %v2133_v43 = vpack.c.bf16 %v454_v38, %v442_v37  ;;  %v1027_v26 = vld [vmem:[#allocation6 + $0x58] sm:$0xff] }
 0x120   :  { %2112 = vmatpush1.bf16.msra.mxu0 %v2111_v44  ;;  %v441_v44 = vld [vmem:[#allocation2 + $0xa00] sm:$0xff] }
 0x121   :  { %2176 = vmatpush1.bf16.msra.mxu1 %v2175_v45  ;;  %2114 = vmatprep.subr.bf16.mxu0 %v2113_v46  ;;  %v453_v45 = vld [vmem:[#allocation2 + $0xa60] sm:$0xff]  ;;  %v443_v46 = vld [vmem:[#allocation2 + $0xa10] sm:$0xff] }
 0x122   :  { %2178 = vmatprep.subr.bf16.mxu1 %v2177_v50  ;;  %v478_v50 = vld [vmem:[#allocation2 + $0xb28] sm:$0xff]  ;;  %v2135_v53 = vpack.c.bf16 %v453_v45, %v441_v44  ;;  %v2199_v54 = vpack.c.bf16 %v455_v48, %v443_v46  ;;  %v1038_v44 = vld [vmem:[#allocation6 + $0xb0] sm:$0xff]  ;;  %v1041_v46 = vld [vmem:[#allocation6 + $0xc8] sm:$0xff] }
 0x123   :  { %v2137_v55 = vpack.c.bf16 %v478_v50, %v466_v49  ;;  %v1031_v27 = vld [vmem:[#allocation6 + $0x78] sm:$0xff] }
 0x124   :  { %2116 = vmatpush1.bf16.msra.mxu0 %v2115_v56  ;;  %v465_v56 = vld [vmem:[#allocation2 + $0xac0] sm:$0xff]  ;;  %v2309_v28 = vpack.c.bf16 %v1031_v27, %v1027_v26  ;;  %v1068_v26 = vld [vmem:[#allocation6 + $0x1a0] sm:$0xff] }
 0x125   :  { %2180 = vmatpush1.bf16.msra.mxu1 %v2179_v57  ;;  %2118 = vmatprep.subr.bf16.mxu0 %v2117_v58  ;;  %v477_v57 = vld [vmem:[#allocation2 + $0xb20] sm:$0xff]  ;;  %v467_v58 = vld [vmem:[#allocation2 + $0xad0] sm:$0xff] }
 0x126   :  { %2182 = vmatprep.subr.bf16.mxu1 %v2181_v61  ;;  %v502_v61 = vld [vmem:[#allocation2 + $0xbe8] sm:$0xff]  ;;  %v2139_v0 = vpack.c.bf16 %v477_v57, %v465_v56  ;;  %v2203_v1 = vpack.c.bf16 %v479_v16, %v467_v58  ;;  %v1046_v56 = vld [vmem:[#allocation6 + $0xf0] sm:$0xff]  ;;  %v1049_v57 = vld [vmem:[#allocation6 + $0x108] sm:$0xff] }
 0x127   :  { %v2141_v2 = vpack.c.bf16 %v502_v61, %v490_v60  ;;  %v1035_v38 = vld [vmem:[#allocation6 + $0x98] sm:$0xff]  ;;  %v1053_v58 = vld [vmem:[#allocation6 + $0x128] sm:$0xff]  ;;  %v1066_v27 = vld [vmem:[#allocation6 + $0x190] sm:$0xff] }
 0x128   :  { %2120 = vmatpush1.bf16.msra.mxu0 %v2119_v3  ;;  %v489_v3 = vld [vmem:[#allocation2 + $0xb80] sm:$0xff] }
 0x129   :  { %2184 = vmatpush1.bf16.msra.mxu1 %v2183_v4  ;;  %2122 = vmatprep.subr.bf16.mxu0 %v2121_v5  ;;  %v501_v4 = vld [vmem:[#allocation2 + $0xbe0] sm:$0xff]  ;;  %v2205_v5 = vpack.c.bf16 %v504_v63, %v492_v62  ;;  %v2225_v62 = vpack.c.bf16 %v1053_v58, %v1049_v57  ;;  %v1048_v63 = vld [vmem:[#allocation6 + $0x100] sm:$0xff] }
 0x12a   :  { %2186 = vmatprep.subr.bf16.mxu1 %v2185_v9  ;;  %v2143_v8 = vpack.c.bf16 %v501_v4, %v489_v3  ;;  %v2207_v9 = vpack.c.bf16 %v503_v7, %v491_v6  ;;  %v1039_v39 = vld [vmem:[#allocation6 + $0xb8] sm:$0xff]  ;;  %v1054_v3 = vld [vmem:[#allocation6 + $0x130] sm:$0xff]  ;;  %v1057_v4 = vld [vmem:[#allocation6 + $0x148] sm:$0xff] }
 0x12b   :  { %v1043_v48 = vld [vmem:[#allocation6 + $0xd8] sm:$0xff] }
 0x12c   :  { %2124 = vmatpush1.bf16.msra.mxu0 %v2123_v17  ;;  %v1016_v17 = vld [vmem:[#allocation6] sm:$0xff]  ;;  %v1047_v51 = vld [vmem:[#allocation6 + $0xf8] sm:$0xff] }
 0x12d   :  { %2188 = vmatpush1.bf16.msra.mxu1 %v2187_v18  ;;  %2126 = vmatprep.subr.bf16.mxu0 %v2125_v19  ;;  %v1020_v18 = vld [vmem:[#allocation6 + $0x20] sm:$0xff]  ;;  %v2305_v19 = vpack.c.bf16 %v1023_v14, %v1019_v12  ;;  %v1055_v16 = vld [vmem:[#allocation6 + $0x138] sm:$0xff] }
 0x12e   :  { %2190 = vmatprep.subr.bf16.mxu1 %v2189_v23  ;;  %v2211_v20 = vpack.c.bf16 %v1020_v18, %v1016_v17  ;;  %v1025_v23 = vld [vmem:[#allocation6 + $0x48] sm:$0xff]  ;;  %v1059_v6 = vld [vmem:[#allocation6 + $0x158] sm:$0xff]  ;;  %v1060_v12 = vld [vmem:[#allocation6 + $0x160] sm:$0xff] }
 0x12f   :  { %v1063_v7 = vld [vmem:[#allocation6 + $0x178] sm:$0xff]  ;;  %v1062_v17 = vld [vmem:[#allocation6 + $0x170] sm:$0xff]  ;;  %v1065_v18 = vld [vmem:[#allocation6 + $0x188] sm:$0xff]  ;;  %v2231_v22 = vpack.c.bf16 %v1060_v12, %v1056_v11 }
 0x130   :  { %2128 = vmatpush1.bf16.msra.mxu0 %v2127_v29  ;;  %v1024_v29 = vld [vmem:[#allocation6 + $0x40] sm:$0xff]  ;;  %v2325_v14 = vpack.c.bf16 %v1063_v7, %v1059_v6  ;;  %v1071_v21 = vld [vmem:[#allocation6 + $0x1b8] sm:$0xff]  ;;  %v1102_v11 = vld [vmem:[#allocation6 + $0x2b0] sm:$0xff] }
 0x131   :  { %2192 = vmatpush1.bf16.msra.mxu1 %v2191_v30  ;;  %2130 = vmatprep.subr.bf16.mxu0 %v2129_v31  ;;  %v1028_v30 = vld [vmem:[#allocation6 + $0x60] sm:$0xff]  ;;  %v1026_v31 = vld [vmem:[#allocation6 + $0x50] sm:$0xff]  ;;  %v1105_v12 = vld [vmem:[#allocation6 + $0x2c8] sm:$0xff] }
 0x132   :  { %2194 = vmatprep.subr.bf16.mxu1 %v2193_v35  ;;  %v2215_v32 = vpack.c.bf16 %v1028_v30, %v1024_v29  ;;  %v1037_v35 = vld [vmem:[#allocation6 + $0xa8] sm:$0xff]  ;;  %v2311_v36 = vpack.c.bf16 %v1030_v33, %v1026_v31  ;;  %v1075_v31 = vld [vmem:[#allocation6 + $0x1d8] sm:$0xff]  ;;  %v1096_v7 = vld [vmem:[#allocation6 + $0x280] sm:$0xff] }
 0x133   :  { %v2217_v37 = vpack.c.bf16 %v1037_v35, %v1033_v34  ;;  %v1073_v29 = vld [vmem:[#allocation6 + $0x1c8] sm:$0xff] }
 0x134   :  { %2132 = vmatpush1.bf16.msra.mxu0 %v2131_v41  ;;  %v2313_v41 = vpack.c.bf16 %v1039_v39, %v1035_v38  ;;  %v1077_v30 = vld [vmem:[#allocation6 + $0x1e8] sm:$0xff]  ;;  %v1074_v38 = vld [vmem:[#allocation6 + $0x1d0] sm:$0xff] }
 0x135   :  { %2196 = vmatpush1.bf16.msra.mxu1 %v2195_v42  ;;  %2134 = vmatprep.subr.bf16.mxu0 %v2133_v43  ;;  %v1036_v42 = vld [vmem:[#allocation6 + $0xa0] sm:$0xff]  ;;  %v1034_v43 = vld [vmem:[#allocation6 + $0x90] sm:$0xff]  ;;  %v2237_v35 = vpack.c.bf16 %v1077_v30, %v1073_v29  ;;  %v1119_v29 = vld [vmem:[#allocation6 + $0x338] sm:$0xff] }
 0x136   :  { %2198 = vmatprep.subr.bf16.mxu1 %v2197_v47  ;;  %v2219_v45 = vpack.c.bf16 %v1036_v42, %v1032_v40  ;;  %v1045_v47 = vld [vmem:[#allocation6 + $0xe8] sm:$0xff]  ;;  %v2315_v49 = vpack.c.bf16 %v1038_v44, %v1034_v43  ;;  %v1078_v40 = vld [vmem:[#allocation6 + $0x1f0] sm:$0xff]  ;;  %v1083_v43 = vld [vmem:[#allocation6 + $0x218] sm:$0xff] }
 0x137   :  { %v2221_v50 = vpack.c.bf16 %v1045_v47, %v1041_v46  ;;  %v1085_v42 = vld [vmem:[#allocation6 + $0x228] sm:$0xff]  ;;  %v1087_v44 = vld [vmem:[#allocation6 + $0x238] sm:$0xff]  ;;  %v2335_v46 = vpack.c.bf16 %v1078_v40, %v1074_v38 }
 0x138   :  { %2136 = vmatpush1.bf16.msra.mxu0 %v2135_v53  ;;  %v1044_v53 = vld [vmem:[#allocation6 + $0xe0] sm:$0xff]  ;;  %v1121_v38 = vld [vmem:[#allocation6 + $0x348] sm:$0xff] }
 0x139   :  { %2200 = vmatpush1.bf16.msra.mxu1 %v2199_v54  ;;  %2138 = vmatprep.subr.bf16.mxu0 %v2137_v55  ;;  %v2317_v54 = vpack.c.bf16 %v1047_v51, %v1043_v48  ;;  %v1042_v55 = vld [vmem:[#allocation6 + $0xd0] sm:$0xff]  ;;  %v2223_v60 = vpack.c.bf16 %v1044_v53, %v1040_v52  ;;  %v1080_v48 = vld [vmem:[#allocation6 + $0x200] sm:$0xff]  ;;  %v2337_v51 = vpack.c.bf16 %v1087_v44, %v1083_v43  ;;  %v1089_v53 = vld [vmem:[#allocation6 + $0x248] sm:$0xff] }
 0x13a   :  { %2202 = vmatprep.subr.bf16.mxu1 %v2201_v59  ;;  %v1051_v59 = vld [vmem:[#allocation6 + $0x118] sm:$0xff]  ;;  %v2319_v61 = vpack.c.bf16 %v1046_v56, %v1042_v55  ;;  %v1086_v52 = vld [vmem:[#allocation6 + $0x230] sm:$0xff] }
 0x13b   :  { %v1091_v55 = vld [vmem:[#allocation6 + $0x258] sm:$0xff] }
 0x13c   :  { %2140 = vmatpush1.bf16.msra.mxu0 %v2139_v0  ;;  %v1052_v0 = vld [vmem:[#allocation6 + $0x120] sm:$0xff]  ;;  %v1095_v56 = vld [vmem:[#allocation6 + $0x278] sm:$0xff] }
 0x13d   :  { %2204 = vmatpush1.bf16.msra.mxu1 %v2203_v1  ;;  %2142 = vmatprep.subr.bf16.mxu0 %v2141_v2  ;;  %v1050_v1 = vld [vmem:[#allocation6 + $0x110] sm:$0xff]  ;;  %v2321_v2 = vpack.c.bf16 %v1055_v16, %v1051_v59  ;;  %v1088_v16 = vld [vmem:[#allocation6 + $0x240] sm:$0xff] }
 0x13e   :  { %2206 = vmatprep.subr.bf16.mxu1 %v2205_v5  ;;  %v1061_v5 = vld [vmem:[#allocation6 + $0x168] sm:$0xff] }
 0x13f   :  { %v2229_v10 = vpack.c.bf16 %v1061_v5, %v1057_v4 }
 0x140   :  { %2144 = vmatpush1.bf16.msra.mxu0 %v2143_v8  ;;  %v2227_v8 = vpack.c.bf16 %v1052_v0, %v1048_v63  ;;  %v1094_v63 = vld [vmem:[#allocation6 + $0x270] sm:$0xff]  ;;  %v1097_v0 = vld [vmem:[#allocation6 + $0x288] sm:$0xff] }
 0x141   :  { %2208 = vmatpush1.bf16.msra.mxu1 %v2207_v9  ;;  %2210 = vmatprep.subr.bf16.mxu0 %v2209_v13  ;;  %v2323_v9 = vpack.c.bf16 %v1054_v3, %v1050_v1  ;;  %v1058_v13 = vld [vmem:[#allocation6 + $0x150] sm:$0xff]  ;;  %v1101_v1 = vld [vmem:[#allocation6 + $0x2a8] sm:$0xff]  ;;  %v1103_v3 = vld [vmem:[#allocation6 + $0x2b8] sm:$0xff] }
 0x142   :  { %2306 = vmatprep.subr.bf16.mxu1 %v2305_v19  ;;  %v1069_v19 = vld [vmem:[#allocation6 + $0x1a8] sm:$0xff]  ;;  %v2249_v6 = vpack.c.bf16 %v1101_v1, %v1097_v0  ;;  %v1132_v0 = vld [vmem:[#allocation6 + $0x3a0] sm:$0xff] }
 0x143   :  { %918 = vmatmul.mubr.f32.vlgmr.msra.gmra.mrb[4].mxu0 %v2802_v15 }
 0x144   :  { %989 = vmatmul.mubr.f32.vlgmr.msra.gmra.mrb[4].mxu1 %v2802_v15  ;;  %2212 = vmatpush1.bf16.msra.mxu0 %v2211_v20  ;;  %v2213_v15 = vpack.c.bf16 %v1029_v25, %v1025_v23  ;;  %v1067_v20 = vld [vmem:[#allocation6 + $0x198] sm:$0xff]  ;;  %v2327_v23 = vpack.c.bf16 %v1062_v17, %v1058_v13  ;;  %v1064_v25 = vld [vmem:[#allocation6 + $0x180] sm:$0xff]  ;;  %v1109_v13 = vld [vmem:[#allocation6 + $0x2e8] sm:$0xff] }
 0x145   :  { %2308 = vmatpush1.bf16.msra.mxu1 %v2307_v24  ;;  %v2233_v24 = vpack.c.bf16 %v1069_v19, %v1065_v18  ;;  %v2235_v33 = vpack.c.bf16 %v1068_v26, %v1064_v25  ;;  %v1111_v17 = vld [vmem:[#allocation6 + $0x2f8] sm:$0xff]  ;;  %v1110_v25 = vld [vmem:[#allocation6 + $0x2f0] sm:$0xff]  ;;  %v1113_v26 = vld [vmem:[#allocation6 + $0x308] sm:$0xff] }
 0x146   :  { %2214 = vmatprep.subr.bf16.mxu0 %v2213_v15  ;;  %2310 = vmatprep.subr.bf16.mxu1 %v2309_v28  ;;  %v2329_v15 = vpack.c.bf16 %v1071_v21, %v1067_v20  ;;  %v1070_v28 = vld [vmem:[#allocation6 + $0x1b0] sm:$0xff]  ;;  %v2253_v20 = vpack.c.bf16 %v1109_v13, %v1105_v12  ;;  %v1104_v21 = vld [vmem:[#allocation6 + $0x2c0] sm:$0xff]  ;;  %v1137_v12 = vld [vmem:[#allocation6 + $0x3c8] sm:$0xff] }
 0x147   :  { %v2331_v34 = vpack.c.bf16 %v1070_v28, %v1066_v27  ;;  %v1117_v27 = vld [vmem:[#allocation6 + $0x328] sm:$0xff]  ;;  %v1115_v28 = vld [vmem:[#allocation6 + $0x318] sm:$0xff] }
 0x148   :  { %2216 = vmatpush1.bf16.msra.mxu0 %v2215_v32  ;;  %v1079_v32 = vld [vmem:[#allocation6 + $0x1f8] sm:$0xff]  ;;  %v1141_v13 = vld [vmem:[#allocation6 + $0x3e8] sm:$0xff] }
 0x149   :  { %2312 = vmatpush1.bf16.msra.mxu1 %v2311_v36  ;;  %2218 = vmatprep.subr.bf16.mxu0 %v2217_v37  ;;  %v1072_v36 = vld [vmem:[#allocation6 + $0x1c0] sm:$0xff]  ;;  %v2333_v39 = vpack.c.bf16 %v1079_v32, %v1075_v31  ;;  %v2257_v32 = vpack.c.bf16 %v1117_v27, %v1113_v26 }
 0x14a   :  { %2314 = vmatprep.subr.bf16.mxu1 %v2313_v41  ;;  %v1076_v37 = vld [vmem:[#allocation6 + $0x1e0] sm:$0xff]  ;;  %v1081_v41 = vld [vmem:[#allocation6 + $0x208] sm:$0xff] }
 0x14b   :  { %v2241_v47 = vpack.c.bf16 %v1085_v42, %v1081_v41  ;;  %v1123_v41 = vld [vmem:[#allocation6 + $0x358] sm:$0xff] }
 0x14c   :  { %2220 = vmatpush1.bf16.msra.mxu0 %v2219_v45  ;;  %v2239_v45 = vpack.c.bf16 %v1076_v37, %v1072_v36  ;;  %v2353_v36 = vpack.c.bf16 %v1119_v29, %v1115_v28  ;;  %v1118_v37 = vld [vmem:[#allocation6 + $0x330] sm:$0xff]  ;;  %v1127_v42 = vld [vmem:[#allocation6 + $0x378] sm:$0xff]  ;;  %v1149_v28 = vld [vmem:[#allocation6 + $0x428] sm:$0xff] }
 0x14d   :  { %2316 = vmatpush1.bf16.msra.mxu1 %v2315_v49  ;;  %2222 = vmatprep.subr.bf16.mxu0 %v2221_v50  ;;  %v1084_v49 = vld [vmem:[#allocation6 + $0x220] sm:$0xff]  ;;  %v1082_v50 = vld [vmem:[#allocation6 + $0x210] sm:$0xff]  ;;  %v1147_v29 = vld [vmem:[#allocation6 + $0x418] sm:$0xff] }
 0x14e   :  { %2318 = vmatprep.subr.bf16.mxu1 %v2317_v54  ;;  %v1093_v54 = vld [vmem:[#allocation6 + $0x268] sm:$0xff]  ;;  %v2243_v57 = vpack.c.bf16 %v1084_v49, %v1080_v48  ;;  %v2339_v58 = vpack.c.bf16 %v1086_v52, %v1082_v50  ;;  %v2357_v48 = vpack.c.bf16 %v1127_v42, %v1123_v41  ;;  %v1122_v49 = vld [vmem:[#allocation6 + $0x350] sm:$0xff] }
 0x14f   :  { %v2245_v59 = vpack.c.bf16 %v1093_v54, %v1089_v53  ;;  %v1126_v50 = vld [vmem:[#allocation6 + $0x370] sm:$0xff] }
 0x150   :  { %2224 = vmatpush1.bf16.msra.mxu0 %v2223_v60  ;;  %v1092_v60 = vld [vmem:[#allocation6 + $0x260] sm:$0xff]  ;;  %v2819_v52 = vld [vmem:[#allocation4] sm:$0xff] }
 0x151   :  { %2320 = vmatpush1.bf16.msra.mxu1 %v2319_v61  ;;  %2226 = vmatprep.subr.bf16.mxu0 %v2225_v62  ;;  %v1090_v61 = vld [vmem:[#allocation6 + $0x250] sm:$0xff]  ;;  %v2341_v62 = vpack.c.bf16 %v1095_v56, %v1091_v55  ;;  %v2247_v4 = vpack.c.bf16 %v1092_v60, %v1088_v16  ;;  %v2359_v55 = vpack.c.bf16 %v1126_v50, %v1122_v49  ;;  %v1131_v16 = vld [vmem:[#allocation6 + $0x398] sm:$0xff] }
 0x152   :  { %2322 = vmatprep.subr.bf16.mxu1 %v2321_v2  ;;  %v1099_v2 = vld [vmem:[#allocation6 + $0x298] sm:$0xff]  ;;  %v2343_v5 = vpack.c.bf16 %v1094_v63, %v1090_v61  ;;  %v1128_v63 = vld [vmem:[#allocation6 + $0x380] sm:$0xff] }
 0x154   :  { %2228 = vmatpush1.bf16.msra.mxu0 %v2227_v8  ;;  %v1100_v8 = vld [vmem:[#allocation6 + $0x2a0] sm:$0xff] }
 0x155   :  { %2324 = vmatpush1.bf16.msra.mxu1 %v2323_v9  ;;  %2230 = vmatprep.subr.bf16.mxu0 %v2229_v10  ;;  %v1098_v9 = vld [vmem:[#allocation6 + $0x290] sm:$0xff]  ;;  %v2345_v10 = vpack.c.bf16 %v1103_v3, %v1099_v2  ;;  %v2251_v18 = vpack.c.bf16 %v1100_v8, %v1096_v7  ;;  %v2267_v8 = vpack.c.bf16 %v1132_v0, %v1128_v63 }
 0x156   :  { %2326 = vmatprep.subr.bf16.mxu1 %v2325_v14  ;;  %v1107_v14 = vld [vmem:[#allocation6 + $0x2d8] sm:$0xff]  ;;  %v2347_v19 = vpack.c.bf16 %v1102_v11, %v1098_v9 }
 0x158   :  { %2232 = vmatpush1.bf16.msra.mxu0 %v2231_v22  ;;  %v1108_v22 = vld [vmem:[#allocation6 + $0x2e0] sm:$0xff] }
 0x159   :  { %2328 = vmatpush1.bf16.msra.mxu1 %v2327_v23  ;;  %2234 = vmatprep.subr.bf16.mxu0 %v2233_v24  ;;  %v1106_v23 = vld [vmem:[#allocation6 + $0x2d0] sm:$0xff]  ;;  %v2349_v24 = vpack.c.bf16 %v1111_v17, %v1107_v14  ;;  %v2255_v30 = vpack.c.bf16 %v1108_v22, %v1104_v21  ;;  %v1139_v14 = vld [vmem:[#allocation6 + $0x3d8] sm:$0xff]  ;;  %v2269_v17 = vpack.c.bf16 %v1141_v13, %v1137_v12 }
 0x15a   :  { %2330 = vmatprep.subr.bf16.mxu1 %v2329_v15  ;;  %v509_v15 = vlaneseq  ;;  %v2351_v31 = vpack.c.bf16 %v1110_v25, %v1106_v23  ;;  %v1142_v25 = vld [vmem:[#allocation6 + $0x3f0] sm:$0xff] }
 0x15c   :  { %2236 = vmatpush1.bf16.msra.mxu0 %v2235_v33  ;;  %v1112_v33 = vld [vmem:[#allocation6 + $0x300] sm:$0xff]  ;;  %v2814_v40 = vshrl.u32 %v509_v15, 7  ;;  %v1145_v15 = vld [vmem:[#allocation6 + $0x408] sm:$0xff] }
 0x15d   :  { %2332 = vmatpush1.bf16.msra.mxu1 %v2331_v34  ;;  %2238 = vmatprep.subr.bf16.mxu0 %v2237_v35  ;;  %v1116_v34 = vld [vmem:[#allocation6 + $0x320] sm:$0xff]  ;;  %v1114_v35 = vld [vmem:[#allocation6 + $0x310] sm:$0xff] }
 0x15e   :  { %2334 = vmatprep.subr.bf16.mxu1 %v2333_v39  ;;  %v1125_v39 = vld [vmem:[#allocation6 + $0x368] sm:$0xff]  ;;  %v2259_v43 = vpack.c.bf16 %v1116_v34, %v1112_v33  ;;  %v2355_v44 = vpack.c.bf16 %v1118_v37, %v1114_v35  ;;  %v2822_v54 = vsub.s32 3, %v2814_v40  ;;  %v2831_v33 = vsub.s32 1, %v2814_v40 }
 0x15f   :  { %v2834_v34 = vsub.s32 2, %v2814_v40  ;;  %v527_v35 = vsub.s32 4, %v2814_v40 }
 0x160   :  { %2240 = vmatpush1.bf16.msra.mxu0 %v2239_v45  ;;  %v2261_v45 = vpack.c.bf16 %v1125_v39, %v1121_v38  ;;  %v516_v37 = vrot.slane %v2819_v52, %v2831_v33 }
 0x161   :  { %2336 = vmatpush1.bf16.msra.mxu1 %v2335_v46  ;;  %2242 = vmatprep.subr.bf16.mxu0 %v2241_v47  ;;  %v1120_v46 = vld [vmem:[#allocation6 + $0x340] sm:$0xff]  ;;  %v520_v38 = vrot.slane %v2819_v52, %v2834_v34  ;;  %v528_v39 = vrot.slane %v2819_v52, %v527_v35 }
 0x162   :  { %2338 = vmatprep.subr.bf16.mxu1 %v2337_v51  ;;  %v1124_v47 = vld [vmem:[#allocation6 + $0x360] sm:$0xff]  ;;  %v2817_v51 = vsub.s32 0, %v2814_v40 }
 0x163   :  { %v2263_v53 = vpack.c.bf16 %v1124_v47, %v1120_v46 }
 0x164   :  { %2244 = vmatpush1.bf16.msra.mxu0 %v2243_v57  ;;  %v512_v56 = vrot.slane %v2819_v52, %v2817_v51  ;;  %v524_v57 = vrot.slane %v2819_v52, %v2822_v54 }
 0x165   :  { %2340 = vmatpush1.bf16.msra.mxu1 %v2339_v58  ;;  %2246 = vmatprep.subr.bf16.mxu0 %v2245_v59  ;;  %v1129_v58 = vld [vmem:[#allocation6 + $0x388] sm:$0xff] }
 0x166   :  { %2342 = vmatprep.subr.bf16.mxu1 %v2341_v62  ;;  %v1133_v59 = vld [vmem:[#allocation6 + $0x3a8] sm:$0xff]  ;;  %v1135_v62 = vld [vmem:[#allocation6 + $0x3b8] sm:$0xff] }
 0x167   :  { %v2265_v61 = vpack.c.bf16 %v1133_v59, %v1129_v58  ;;  %v535_v59 = vsub.s32 6, %v2814_v40 }
 0x168   :  { %2248 = vmatpush1.bf16.msra.mxu0 %v2247_v4  ;;  %v2361_v4 = vpack.c.bf16 %v1135_v62, %v1131_v16  ;;  %v539_v16 = vsub.s32 7, %v2814_v40 }
 0x169   :  { %2344 = vmatpush1.bf16.msra.mxu1 %v2343_v5  ;;  %2250 = vmatprep.subr.bf16.mxu0 %v2249_v6  ;;  %v1130_v5 = vld [vmem:[#allocation6 + $0x390] sm:$0xff] }
 0x16a   :  { %2346 = vmatprep.subr.bf16.mxu1 %v2345_v10  ;;  %v1134_v6 = vld [vmem:[#allocation6 + $0x3b0] sm:$0xff]  ;;  %v540_v62 = vrot.slane %v2819_v52, %v539_v16  ;;  %v1171_v16 = vld [vmem:[#allocation6 + $0x4d8] sm:$0xff] }
 0x16b   :  { %v2363_v9 = vpack.c.bf16 %v1134_v6, %v1130_v5 }
 0x16c   :  { %2252 = vmatpush1.bf16.msra.mxu0 %v2251_v18  ;;  %v1143_v18 = vld [vmem:[#allocation6 + $0x3f8] sm:$0xff] }
 0x16d   :  { %2348 = vmatpush1.bf16.msra.mxu1 %v2347_v19  ;;  %2254 = vmatprep.subr.bf16.mxu0 %v2253_v20  ;;  %v1136_v19 = vld [vmem:[#allocation6 + $0x3c0] sm:$0xff]  ;;  %v2365_v22 = vpack.c.bf16 %v1143_v18, %v1139_v14 }
 0x16e   :  { %2350 = vmatprep.subr.bf16.mxu1 %v2349_v24  ;;  %v1140_v20 = vld [vmem:[#allocation6 + $0x3e0] sm:$0xff]  ;;  %v1138_v24 = vld [vmem:[#allocation6 + $0x3d0] sm:$0xff] }
 0x16f   :  { %v2271_v23 = vpack.c.bf16 %v1140_v20, %v1136_v19  ;;  %v2367_v26 = vpack.c.bf16 %v1142_v25, %v1138_v24  ;;  %v1144_v18 = vld [vmem:[#allocation6 + $0x400] sm:$0xff] }
 0x170   :  { %2256 = vmatpush1.bf16.msra.mxu0 %v2255_v30  ;;  %v2273_v30 = vpack.c.bf16 %v1149_v28, %v1145_v15  ;;  %v1148_v19 = vld [vmem:[#allocation6 + $0x420] sm:$0xff]  ;;  %v1155_v15 = vld [vmem:[#allocation6 + $0x458] sm:$0xff] }
 0x171   :  { %2352 = vmatpush1.bf16.msra.mxu1 %v2351_v31  ;;  %2258 = vmatprep.subr.bf16.mxu0 %v2257_v32  ;;  %v1151_v31 = vld [vmem:[#allocation6 + $0x438] sm:$0xff] }
 0x172   :  { %2354 = vmatprep.subr.bf16.mxu1 %v2353_v36  ;;  %v2369_v32 = vpack.c.bf16 %v1151_v31, %v1147_v29  ;;  %v531_v36 = vsub.s32 5, %v2814_v40  ;;  %v1159_v28 = vld [vmem:[#allocation6 + $0x478] sm:$0xff] }
 0x174   :  { %2260 = vmatpush1.bf16.msra.mxu0 %v2259_v43  ;;  %v532_v41 = vrot.slane %v2819_v52, %v531_v36  ;;  %v1152_v36 = vld [vmem:[#allocation6 + $0x440] sm:$0xff] }
 0x175   :  { %2356 = vmatpush1.bf16.msra.mxu1 %v2355_v44  ;;  %2262 = vmatprep.subr.bf16.mxu0 %v2261_v45 }
 0x176   :  { %2358 = vmatprep.subr.bf16.mxu1 %v2357_v48 }
 0x178   :  { %2264 = vmatpush1.bf16.msra.mxu0 %v2263_v53 }
 0x179   :  { %2360 = vmatpush1.bf16.msra.mxu1 %v2359_v55  ;;  %2266 = vmatprep.subr.bf16.mxu0 %v2265_v61  ;;  %v536_v61 = vrot.slane %v2819_v52, %v535_v59  ;;  %v1173_v59 = vld [vmem:[#allocation6 + $0x4e8] sm:$0xff] }
 0x17a   :  { %2362 = vmatprep.subr.bf16.mxu1 %v2361_v4 }
 0x17c   :  { %2268 = vmatpush1.bf16.msra.mxu0 %v2267_v8 }
 0x17d   :  { %2364 = vmatpush1.bf16.msra.mxu1 %v2363_v9  ;;  %2270 = vmatprep.subr.bf16.mxu0 %v2269_v17 }
 0x17e   :  { %2366 = vmatprep.subr.bf16.mxu1 %v2365_v22  ;;  %v1150_v22 = vld [vmem:[#allocation6 + $0x430] sm:$0xff] }
 0x180   :  { %2272 = vmatpush1.bf16.msra.mxu0 %v2271_v23  ;;  %v1153_v23 = vld [vmem:[#allocation6 + $0x448] sm:$0xff] }
 0x181   :  { %2368 = vmatpush1.bf16.msra.mxu1 %v2367_v26  ;;  %2274 = vmatprep.subr.bf16.mxu0 %v2273_v30  ;;  %v1157_v26 = vld [vmem:[#allocation6 + $0x468] sm:$0xff] }
 0x182   :  { %2370 = vmatprep.subr.bf16.mxu1 %v2369_v32  ;;  %v2275_v32 = vpack.c.bf16 %v1148_v19, %v1144_v18  ;;  %v1185_v18 = vld [vmem:[#allocation6 + $0x548] sm:$0xff] }
 0x183   :  { %v1189_v19 = vld [vmem:[#allocation6 + $0x568] sm:$0xff] }
 0x196   :  { %v635_v60 = vpop.f32.mrb[0].mxu0 }
 0x197   :  { %v636_v1 = vadd.f32 %v635_v60, %v512_v56  ;;  %v706_v2 = vpop.f32.mrb[0].mxu1  ;;  %v637_v3 = vpop.f32.mrb[1].mxu0  ;;  %v506_v60 = vld [vmem:[#allocation4 + $0x8] sm:$0xf] }
 0x198   :  { %v708_v7 = vpop.f32.mrb[1].mxu1  ;;  %v638_v42 = vadd.f32 %v637_v3, %v516_v37  ;;  %v707_v43 = vadd.f32 %v706_v2, %v520_v38  ;;  %v544_v63 = vrot.slane %v506_v60, %v2817_v51  ;;  %v552_v0 = vrot.slane %v506_v60, %v2834_v34  ;;  %v1156_v37 = vld [vmem:[#allocation6 + $0x460] sm:$0xff] }
 0x199   :  { %v995_v10 = vmax.f32 %v636_v1, 0.0  ;;  %v709_v11 = vadd.f32 %v708_v7, %v524_v57  ;;  %v548_v1 = vrot.slane %v506_v60, %v2831_v33  ;;  %v556_v2 = vrot.slane %v506_v60, %v2822_v54  ;;  %v1175_v60 = vld [vmem:[#allocation6 + $0x4f8] sm:$0xff] }
 0x19a   :  { %v996_v50 = vmax.f32 %v638_v42, 0.0  ;;  %v997_v55 = vmax.f32 %v707_v43, 0.0  ;;  %v1154_v42 = vld [vmem:[#allocation6 + $0x450] sm:$0xff] }
 0x19b   :  { %v998_v21 = vmax.f32 %v709_v11, 0.0  ;;  %v1158_v43 = vld [vmem:[#allocation6 + $0x470] sm:$0xff] }
 0x19d   :  { %v2828_v27 = vmax.f32 %v995_v10, %v998_v21  ;;  %v1146_v21 = vld [vmem:[#allocation6 + $0x410] sm:$0xff] }
 0x19e   :  { %v2371_v35 = vpack.c.bf16 %v1150_v22, %v1146_v21  ;;  %v1191_v21 = vld [vmem:[#allocation6 + $0x578] sm:$0xff] }
 0x1d6   :  { %v777_v44 = vpop.f32.mrb[2].mxu0 }
 0x1d7   :  { %v778_v45 = vadd.f32 %v777_v44, %v528_v39  ;;  %v848_v46 = vpop.f32.mrb[2].mxu1  ;;  %v779_v47 = vpop.f32.mrb[3].mxu0  ;;  %v2277_v39 = vpack.c.bf16 %v1157_v26, %v1153_v23  ;;  %v1161_v44 = vld [vmem:[#allocation6 + $0x488] sm:$0xff]  ;;  %v2293_v26 = vpack.c.bf16 %v1189_v19, %v1185_v18  ;;  %v1535_v19 = vld [vmem:[#allocation9 + $0x70] sm:$0xff] }
 0x1d8   :  { %v780_v48 = vadd.f32 %v779_v47, %v532_v41  ;;  %v850_v49 = vpop.f32.mrb[3].mxu1  ;;  %v849_v3 = vadd.f32 %v848_v46, %v536_v61  ;;  %v2373_v41 = vpack.c.bf16 %v1159_v28, %v1155_v15  ;;  %v1163_v46 = vld [vmem:[#allocation6 + $0x498] sm:$0xff]  ;;  %v2648_v61 = vmov 0.0   ;;  %v1186_v28 = vld [vmem:[#allocation6 + $0x550] sm:$0xff] }
 0x1d9   :  { %v999_v53 = vmax.f32 %v778_v45, 0.0  ;;  %v851_v4 = vadd.f32 %v850_v49, %v540_v62  ;;  %v1165_v45 = vld [vmem:[#allocation6 + $0x4a8] sm:$0xff]  ;;  %v1167_v47 = vld [vmem:[#allocation6 + $0x4b8] sm:$0xff]  ;;  %v1160_v49 = vld [vmem:[#allocation6 + $0x480] sm:$0xff] }
 0x1da   :  { %v1000_v56 = vmax.f32 %v780_v48, 0.0  ;;  %v1001_v52 = vmax.f32 %v849_v3, 0.0  ;;  %v2375_v48 = vpack.c.bf16 %v1158_v43, %v1154_v42  ;;  %v2381_v3 = vpack.c.bf16 %v1175_v60, %v1171_v16 }
 0x1db   :  { %v1008_v57 = vmax.f32 %v996_v50, %v999_v53  ;;  %v1002_v13 = vmax.f32 %v851_v4, 0.0  ;;  %v1164_v50 = vld [vmem:[#allocation6 + $0x4a0] sm:$0xff]  ;;  %v2281_v53 = vpack.c.bf16 %v1165_v45, %v1161_v44  ;;  %v1170_v4 = vld [vmem:[#allocation6 + $0x4d0] sm:$0xff] }
 0x1dc   :  { %v1009_v58 = vmax.f32 %v997_v55, %v1000_v56  ;;  %v2377_v55 = vpack.c.bf16 %v1167_v47, %v1163_v46  ;;  %v1162_v56 = vld [vmem:[#allocation6 + $0x490] sm:$0xff]  ;;  %v2283_v62 = vpack.c.bf16 %v1164_v50, %v1160_v49  ;;  %v1201_v46 = vld [vmem:[#allocation6 + $0x5c8] sm:$0xff] }
 0x1dd   :  { %v1194_v44 = vld [vmem:[#allocation6 + $0x590] sm:$0xff]  ;;  %v1205_v47 = vld [vmem:[#allocation6 + $0x5e8] sm:$0xff] }
 0x1de   :  { %v1198_v45 = vld [vmem:[#allocation6 + $0x5b0] sm:$0xff] }
 0x1df   :  { %v2395_v50 = vpack.c.bf16 %v1198_v45, %v1194_v44  ;;  %v1628_v44 = vld [vmem:[%s2939_s7 + $0x68] sm:$0xff] }
 0x216   :  { %v919_v5 = vpop.f32.mrb[4].mxu0 }
 0x217   :  { %v920_v6 = vadd.f32 %v919_v5, %v544_v63  ;;  %v990_v7 = vpop.f32.mrb[4].mxu1  ;;  %v921_v8 = vpop.f32.mrb[5].mxu0  ;;  %v1174_v5 = vld [vmem:[#allocation6 + $0x4f0] sm:$0xff] }
 0x218   :  { %v991_v40 = vadd.f32 %v990_v7, %v552_v0  ;;  %v922_v9 = vadd.f32 %v921_v8, %v548_v1  ;;  %v992_v10 = vpop.f32.mrb[5].mxu1  ;;  %v1168_v0 = vld [vmem:[#allocation6 + $0x4c0] sm:$0xff]  ;;  %v1181_v7 = vld [vmem:[#allocation6 + $0x528] sm:$0xff]  ;;  %v1179_v8 = vld [vmem:[#allocation6 + $0x518] sm:$0xff] }
 0x219   :  { %v1003_v11 = vmax.f32 %v920_v6, 0.0  ;;  %v993_v12 = vadd.f32 %v992_v10, %v556_v2  ;;  %v1172_v1 = vld [vmem:[#allocation6 + $0x4e0] sm:$0xff]  ;;  %v1177_v6 = vld [vmem:[#allocation6 + $0x508] sm:$0xff]  ;;  %v2383_v10 = vpack.c.bf16 %v1174_v5, %v1170_v4 }
 0x21a   :  { %v1005_v14 = vmax.f32 %v991_v40, 0.0  ;;  %v1004_v17 = vmax.f32 %v922_v9, 0.0  ;;  %v1183_v40 = vld [vmem:[#allocation6 + $0x538] sm:$0xff]  ;;  %v2287_v9 = vpack.c.bf16 %v1172_v1, %v1168_v0  ;;  %v2649_v1 = vmov 0.0|0.0   ;;  %v1525_v5 = vld [vmem:[#allocation9 + $0x20] sm:$0xff] }
 0x21b   :  { %v1006_v20 = vmax.f32 %v993_v12, 0.0  ;;  %v1180_v12 = vld [vmem:[#allocation6 + $0x520] sm:$0xff] }
 0x21c   :  { %v1011_v24 = vmax.f32 %v1002_v13, %v1005_v14  ;;  %v1010_v25 = vmax.f32 %v1001_v52, %v1004_v17  ;;  %v2289_v52 = vpack.c.bf16 %v1181_v7, %v1177_v6  ;;  %v2385_v13 = vpack.c.bf16 %v1183_v40, %v1179_v8  ;;  %v1178_v14 = vld [vmem:[#allocation6 + $0x510] sm:$0xff]  ;;  %v1528_v40 = vld [vmem:[#allocation9 + $0x38] sm:$0xff] }
 0x21d   :  { %v1012_v29 = vmax.f32 %v1003_v11, %v1006_v20  ;;  %v1176_v11 = vld [vmem:[#allocation6 + $0x500] sm:$0xff]  ;;  %v1182_v17 = vld [vmem:[#allocation6 + $0x530] sm:$0xff]  ;;  %v1187_v20 = vld [vmem:[#allocation6 + $0x558] sm:$0xff] }
 0x21e   :  { %v1013_v30 = vmax.f32 %v2828_v27, %v1010_v25  ;;  %v1014_v31 = vmax.f32 %v1008_v57, %v1011_v24  ;;  %v2279_v27 = vpack.c.bf16 %v1156_v37, %v1152_v36  ;;  %v1166_v57 = vld [vmem:[#allocation6 + $0x4b0] sm:$0xff]  ;;  %v2291_v22 = vpack.c.bf16 %v1180_v12, %v1176_v11  ;;  %v1184_v24 = vld [vmem:[#allocation6 + $0x540] sm:$0xff] }
 0x21f   :  { %v2853_v38 = vmax.f32 %v1009_v58, %v1012_v29  ;;  %v1169_v58 = vld [vmem:[#allocation6 + $0x4c8] sm:$0xff]  ;;  %v2379_v63 = vpack.c.bf16 %v1166_v57, %v1162_v56  ;;  %v2387_v23 = vpack.c.bf16 %v1182_v17, %v1178_v14  ;;  %v1188_v25 = vld [vmem:[#allocation6 + $0x560] sm:$0xff]  ;;  %v2389_v15 = vpack.c.bf16 %v1191_v21, %v1187_v20  ;;  %v1190_v29 = vld [vmem:[#allocation6 + $0x570] sm:$0xff] }
 0x220   :  { %1294 = vmatprep.mubr.f32.mxu0 %v1014_v31  ;;  %1436 = vmatprep.mubr.f32.mxu1 %v1014_v31  ;;  %v2285_v2 = vpack.c.bf16 %v1173_v59, %v1169_v58  ;;  %v1197_v31 = vld [vmem:[#allocation6 + $0x5a8] sm:$0xff]  ;;  %v2295_v36 = vpack.c.bf16 %v1188_v25, %v1184_v24  ;;  %v2391_v37 = vpack.c.bf16 %v1190_v29, %v1186_v28  ;;  %v1204_v57 = vld [vmem:[#allocation6 + $0x5e0] sm:$0xff]  ;;  %v1202_v58 = vld [vmem:[#allocation6 + $0x5d0] sm:$0xff] }
 0x221   :  { %1295 = vmatmul.mubr.f32.vlgmr.msra.gmra.mrb[6].mxu0 %v1013_v30  ;;  %1437 = vmatmul.mubr.f32.vlgmr.msra.gmra.mrb[6].mxu1 %v1013_v30  ;;  %v1193_v30 = vld [vmem:[#allocation6 + $0x588] sm:$0xff]  ;;  %v1206_v59 = vld [vmem:[#allocation6 + $0x5f0] sm:$0xff]  ;;  %v1536_v20 = vld [vmem:[#allocation9 + $0x78] sm:$0xff] }
 0x222   :  { %2276 = vmatpush1.bf16.msra.mxu0 %v2275_v32  ;;  %2372 = vmatpush1.bf16.msra.mxu1 %v2371_v35  ;;  %v1195_v32 = vld [vmem:[#allocation6 + $0x598] sm:$0xff]  ;;  %v2297_v42 = vpack.c.bf16 %v1197_v31, %v1193_v30  ;;  %v2399_v60 = vpack.c.bf16 %v1206_v59, %v1202_v58  ;;  %v1526_v6 = vld [vmem:[#allocation9 + $0x28] sm:$0xff]  ;;  %v1533_v14 = vld [vmem:[#allocation9 + $0x60] sm:$0xff]  ;;  %v2423_v21 = vpack.c.bf16 %v1536_v20, %v1535_v19 }
 0x223   :  { %2278 = vmatprep.subr.bf16.mxu0 %v2277_v39  ;;  %2374 = vmatprep.subr.bf16.mxu1 %v2373_v41  ;;  %v1199_v35 = vld [vmem:[#allocation6 + $0x5b8] sm:$0xff]  ;;  %v1192_v39 = vld [vmem:[#allocation6 + $0x580] sm:$0xff]  ;;  %v2408_v7 = vpack.c.bf16 %v1526_v6, %v1525_v5  ;;  %v1530_v11 = vld [vmem:[#allocation9 + $0x48] sm:$0xff] }
 0x224   :  { %1365 = vmatprep.mubr.f32.mxu0 %v2648_v61  ;;  %1507 = vmatprep.mubr.f32.mxu1 %v2648_v61  ;;  %v1196_v41 = vld [vmem:[#allocation6 + $0x5a0] sm:$0xff]  ;;  %v2393_v43 = vpack.c.bf16 %v1199_v35, %v1195_v32  ;;  %v1527_v8 = vld [vmem:[#allocation9 + $0x30] sm:$0xff]  ;;  %v1534_v17 = vld [vmem:[#allocation9 + $0x68] sm:$0xff] }
 0x225   :  { %v2299_v49 = vpack.c.bf16 %v1196_v41, %v1192_v39  ;;  %v1531_v12 = vld [vmem:[#allocation9 + $0x50] sm:$0xff]  ;;  %v2420_v18 = vpack.c.bf16 %v1534_v17, %v1533_v14  ;;  %v1617_v24 = vld [vmem:[%s2939_s7 + $0x10] sm:$0xff]  ;;  %v1620_v28 = vld [vmem:[%s2939_s7 + $0x28] sm:$0xff] }
 0x226   :  { %2280 = vmatpush1.bf16.msra.mxu0 %v2279_v27  ;;  %2376 = vmatpush1.bf16.msra.mxu1 %v2375_v48  ;;  %v1203_v27 = vld [vmem:[#allocation6 + $0x5d8] sm:$0xff]  ;;  %v1621_v30 = vld [vmem:[%s2939_s7 + $0x30] sm:$0xff]  ;;  %v1622_v31 = vld [vmem:[%s2939_s7 + $0x38] sm:$0xff] }
 0x227   :  { %2282 = vmatprep.subr.bf16.mxu0 %v2281_v53  ;;  %2378 = vmatprep.subr.bf16.mxu1 %v2377_v55  ;;  %v1207_v48 = vld [vmem:[#allocation6 + $0x5f8] sm:$0xff]  ;;  %v1200_v53 = vld [vmem:[#allocation6 + $0x5c0] sm:$0xff]  ;;  %v2301_v55 = vpack.c.bf16 %v1205_v47, %v1201_v46  ;;  %v2435_v32 = vpack.c.bf16 %v1622_v31, %v1621_v30  ;;  %v1626_v41 = vld [vmem:[%s2939_s7 + $0x58] sm:$0xff] }
 0x228   :  { %v2397_v56 = vpack.c.bf16 %v1207_v48, %v1203_v27  ;;  %v2303_v16 = vpack.c.bf16 %v1204_v57, %v1200_v53  ;;  %v1623_v35 = vld [vmem:[%s2939_s7 + $0x40] sm:$0xff]  ;;  %v1625_v39 = vld [vmem:[%s2939_s7 + $0x50] sm:$0xff]  ;;  %v1208_v46 = vld [vmem:[#allocation7] sm:$0xf] }
 0x229   :  { %v1213_v47 = vrot.slane %v1208_v46, %v2817_v51  ;;  %v1221_v27 = vrot.slane %v1208_v46, %v2834_v34  ;;  %v1217_v48 = vrot.slane %v1208_v46, %v2831_v33  ;;  %v1630_v33 = vld [vmem:[%s2939_s7 + $0x78] sm:$0xff] }
 0x22a   :  { %2284 = vmatpush1.bf16.msra.mxu0 %v2283_v62  ;;  %2380 = vmatpush1.bf16.msra.mxu1 %v2379_v63  ;;  %v1521_v62 = vld [vmem:[#allocation9] sm:$0xff]  ;;  %v1522_v63 = vld [vmem:[#allocation9 + $0x8] sm:$0xff] }
 0x22b   :  { %2286 = vmatprep.subr.bf16.mxu0 %v2285_v2  ;;  %2382 = vmatprep.subr.bf16.mxu1 %v2381_v3  ;;  %v2402_v0 = vpack.c.bf16 %v1522_v63, %v1521_v62  ;;  %v1523_v2 = vld [vmem:[#allocation9 + $0x10] sm:$0xff]  ;;  %v1524_v3 = vld [vmem:[#allocation9 + $0x18] sm:$0xff] }
 0x22c   :  { %v2405_v4 = vpack.c.bf16 %v1524_v3, %v1523_v2  ;;  %v1719_v3 = vld [vmem:[#allocation10] ss:$0 sm:$0xff] }
 0x22e   :  { %2288 = vmatpush1.bf16.msra.mxu0 %v2287_v9  ;;  %2384 = vmatpush1.bf16.msra.mxu1 %v2383_v10  ;;  %v2411_v9 = vpack.c.bf16 %v1528_v40, %v1527_v8  ;;  %v1529_v10 = vld [vmem:[#allocation9 + $0x40] sm:$0xff] }
 0x22f   :  { %2290 = vmatprep.subr.bf16.mxu0 %v2289_v52  ;;  %2386 = vmatprep.subr.bf16.mxu1 %v2385_v13  ;;  %v1532_v52 = vld [vmem:[#allocation9 + $0x58] sm:$0xff]  ;;  %v1720_v8 = vld [vmem:[#allocation12] ss:$0 sm:$0xff] }
 0x230   :  { %v2417_v13 = vpack.c.bf16 %v1532_v52, %v1531_v12 }
 0x232   :  { %2292 = vmatpush1.bf16.msra.mxu0 %v2291_v22  ;;  %2388 = vmatpush1.bf16.msra.mxu1 %v2387_v23  ;;  %v1615_v22 = vld [vmem:[%s2939_s7] sm:$0xff]  ;;  %v1616_v23 = vld [vmem:[%s2939_s7 + $0x8] sm:$0xff] }
 0x233   :  { %2294 = vmatprep.subr.bf16.mxu0 %v2293_v26  ;;  %2390 = vmatprep.subr.bf16.mxu1 %v2389_v15  ;;  %v2426_v25 = vpack.c.bf16 %v1616_v23, %v1615_v22  ;;  %v1618_v26 = vld [vmem:[%s2939_s7 + $0x18] sm:$0xff] }
 0x234   :  { %v2429_v15 = vpack.c.bf16 %v1618_v26, %v1617_v24 }
 0x236   :  { %2296 = vmatpush1.bf16.msra.mxu0 %v2295_v36  ;;  %2392 = vmatpush1.bf16.msra.mxu1 %v2391_v37  ;;  %v1624_v36 = vld [vmem:[%s2939_s7 + $0x48] sm:$0xff] }
 0x237   :  { %2298 = vmatprep.subr.bf16.mxu0 %v2297_v42  ;;  %2394 = vmatprep.subr.bf16.mxu1 %v2393_v43  ;;  %v2438_v37 = vpack.c.bf16 %v1624_v36, %v1623_v35  ;;  %v2441_v42 = vpack.c.bf16 %v1626_v41, %v1625_v39  ;;  %v1627_v43 = vld [vmem:[%s2939_s7 + $0x60] sm:$0xff] }
 0x238   :  { %v2444_v45 = vpack.c.bf16 %v1628_v44, %v1627_v43 }
 0x23a   :  { %2300 = vmatpush1.bf16.msra.mxu0 %v2299_v49  ;;  %2396 = vmatpush1.bf16.msra.mxu1 %v2395_v50  ;;  %v1225_v49 = vrot.slane %v1208_v46, %v2822_v54  ;;  %v1629_v54 = vld [vmem:[%s2939_s7 + $0x70] sm:$0xff] }
 0x23b   :  { %2302 = vmatprep.subr.bf16.mxu0 %v2301_v55  ;;  %2398 = vmatprep.subr.bf16.mxu1 %v2397_v56  ;;  %v2447_v34 = vpack.c.bf16 %v1630_v33, %v1629_v54 }
 0x23e   :  { %2304 = vmatpush1.bf16.msra.mxu0 %v2303_v16  ;;  %2400 = vmatpush1.bf16.msra.mxu1 %v2399_v60 }
 0x23f   :  { %2401 = vmatprep.subr.bf16.mxu0 %v2649_v1  ;;  %2425 = vmatprep.subr.bf16.mxu1 %v2649_v1 }
 0x241   :  { %1366 = vmatmul.mubr.f32.vlgmr.msra.gmra.mrb[6].mxu0 %v2853_v38  ;;  %1508 = vmatmul.mubr.f32.vlgmr.msra.gmra.mrb[6].mxu1 %v2853_v38  ;;  %v2414_v38 = vpack.c.bf16 %v1530_v11, %v1529_v10 }
 0x242   :  { %2403 = vmatpush3.bf16.msra.mxu0 %v2402_v0  ;;  %1787 = vmatprep.mubr.msk.f32.mxu0 %vm2650_vm0, %v2648_v61 }
 0x243   :  { %2404 = vmatprep.subr.bf16.mxu0 %v2649_v1  ;;  %1822 = vmatprep.mubr.msk.f32.mxu1 %vm2650_vm0, %v2648_v61  ;;  %v1619_v61 = vld [vmem:[%s2939_s7 + $0x20] sm:$0xff] }
 0x244   :  { %2427 = vmatpush3.bf16.msra.mxu1 %v2426_v25  ;;  %v2432_v29 = vpack.c.bf16 %v1620_v28, %v1619_v61 }
 0x245   :  { %2428 = vmatprep.subr.bf16.mxu1 %v2649_v1 }
 0x246   :  { %2406 = vmatpush3.bf16.msra.mxu0 %v2405_v4 }
 0x247   :  { %2407 = vmatprep.subr.bf16.mxu0 %v2649_v1 }
 0x248   :  { %2430 = vmatpush3.bf16.msra.mxu1 %v2429_v15 }
 0x249   :  { %2431 = vmatprep.subr.bf16.mxu1 %v2649_v1 }
 0x24a   :  { %2409 = vmatpush3.bf16.msra.mxu0 %v2408_v7 }
 0x24b   :  { %2410 = vmatprep.subr.bf16.mxu0 %v2649_v1 }
 0x24c   :  { %2433 = vmatpush3.bf16.msra.mxu1 %v2432_v29 }
 0x24d   :  { %2434 = vmatprep.subr.bf16.mxu1 %v2649_v1 }
 0x24e   :  { %2412 = vmatpush3.bf16.msra.mxu0 %v2411_v9 }
 0x24f   :  { %2413 = vmatprep.subr.bf16.mxu0 %v2649_v1 }
 0x250   :  { %2436 = vmatpush3.bf16.msra.mxu1 %v2435_v32 }
 0x251   :  { %2437 = vmatprep.subr.bf16.mxu1 %v2649_v1 }
 0x252   :  { %2415 = vmatpush3.bf16.msra.mxu0 %v2414_v38 }
 0x253   :  { %2416 = vmatprep.subr.bf16.mxu0 %v2649_v1 }
 0x254   :  { %2439 = vmatpush3.bf16.msra.mxu1 %v2438_v37 }
 0x255   :  { %2440 = vmatprep.subr.bf16.mxu1 %v2649_v1 }
 0x256   :  { %2418 = vmatpush3.bf16.msra.mxu0 %v2417_v13 }
 0x257   :  { %2419 = vmatprep.subr.bf16.mxu0 %v2649_v1 }
 0x258   :  { %2442 = vmatpush3.bf16.msra.mxu1 %v2441_v42 }
 0x259   :  { %2443 = vmatprep.subr.bf16.mxu1 %v2649_v1 }
 0x25a   :  { %2421 = vmatpush3.bf16.msra.mxu0 %v2420_v18 }
 0x25b   :  { %2422 = vmatprep.subr.bf16.mxu0 %v2649_v1 }
 0x25c   :  { %2445 = vmatpush3.bf16.msra.mxu1 %v2444_v45 }
 0x25d   :  { %2446 = vmatprep.subr.bf16.mxu1 %v2649_v1 }
 0x25e   :  { %2424 = vmatpush3.bf16.msra.mxu0 %v2423_v21 }
 0x260   :  { %2448 = vmatpush3.bf16.msra.mxu1 %v2447_v34 }
 0x314   :  { %v1367_v50 = vpop.f32.mrb[6].mxu0  ;;  %v1509_v53 = vpop.f32.mrb[6].mxu1 }
 0x315   :  { %v2449_v55 = vadd.f32 %v1367_v50, %v1213_v47  ;;  %v2451_v56 = vadd.f32 %v1509_v53, %v1221_v27  ;;  %v1369_v57 = vpop.f32.mrb[7].mxu0  ;;  %v1511_v58 = vpop.f32.mrb[7].mxu1 }
 0x316   :  { %v2450_v59 = vadd.f32 %v1369_v57, %v1217_v48  ;;  %v2452_v16 = vadd.f32 %v1511_v58, %v1225_v49 }
 0x317   :  { %v1514_v60 = vmax.f32 %v2449_v55, 0.0  ;;  %v1516_v62 = vmax.f32 %v2451_v56, 0.0 }
 0x318   :  { %v1515_v63 = vmax.f32 %v2450_v59, 0.0  ;;  %v1517_v0 = vmax.f32 %v2452_v16, 0.0 }
 0x31a   :  { %v1518_v1 = vmax.f32 %v1514_v60, %v1515_v63  ;;  %v1519_v51 = vmax.f32 %v1516_v62, %v1517_v0 }
 0x31c   :  { %v1520_v2 = vmax.f32 %v1518_v1, %v1519_v51 }
 0x31e   :  { %1788 = vmatmul.mubr.f32.vlgmr.msra.gmra.mrb[8].mxu0 %v1520_v2 }
 0x3f1   :  { %v1610_v4 = vpop.f32.mrb[8].mxu0 }
 0x3f2   :  { %v1611_v5 = vadd.f32 %v1719_v3, %v1610_v4  ;;  %v1789_v6 = vpop.f32.mrb[9].mxu0 }
 0x3f4   :  { %v1614_v7 = vmax.f32 %v1611_v5, 0.0 }
 0x3f6   :  { %1823 = vmatmul.mubr.f32.vlgmr.msra.gmra.mrb[8].mxu1 %v1614_v7 }
 0x4c9   :  { %v1704_v40 = vpop.f32.mrb[8].mxu1 }
 0x4ca   :  { %v1705_v9 = vadd.f32 %v1720_v8, %v1704_v40  ;;  %v1824_v10 = vpop.f32.mrb[9].mxu1 }
 0x4cc   :  { %v1708_v11 = vmax.f32 %v1705_v9, 0.0 }
 0x4ce   :  { %1710 = vst.msk [vmem:[%s2941_s9] sm:$0xff] %vm1709_vm1, %v1708_v11 }
 0x4cf   :  { %1715 = vsyncpa [#allocation3], 1 }
 0x4d0   :  { %1716 = vsyncpa [#allocation5], 1 }
 0x4d1   :  { %1717 = vsyncpa [#allocation8], 1 }
 0x4d2   :  { %1718 = vsyncpa [#allocation11], 1 }

</bundles_post_ra>
